<compile_context>
chip_gen: v5e
topology: v5e:2x2
jax: 0.10.0
libtpu: 0.0.40
codegen_flags: <defaults>
</compile_context>

<pallas_src>
import jax
import jax.numpy as jnp
from jax.experimental import pallas as pl
from jax.experimental.pallas import tpu as pltpu


def _lif_step(v_mem, inp, thr):
    """MultiStepLIFNode step: tau=2.0, v_reset=0.0 (hard reset).

    Membrane math stays f32; the spike is emitted directly in bf16 ({0,1} is
    exact in bf16) so downstream matmuls / stores get a narrow, MXU-native dtype.
    """
    v_mem = v_mem + (inp.astype(jnp.float32) - v_mem) * 0.5   # charge: v += (x - v)/tau
    fired = v_mem >= thr                                      # fire
    spk = jnp.where(fired, 1.0, 0.0)                          # f32 {0,1}
    v_mem = jnp.where(fired, 0.0, v_mem)                      # hard reset to 0
    return v_mem, spk.astype(jnp.bfloat16)


def make_block_kernel(T, Np, C):
    """Kernel factory: T, Np (lane-padded N), C are static so the T loops unroll."""

    def kernel(x_ref, mask_ref, wqkv_ref, bqkv_ref, wph_ref, wpl_ref, bp_ref,
               out_x_ref, out_attn_ref, spk_ref, s_tn_ref):
        # --- phase 1: q/k/v conv (+folded BN) for ALL timesteps: one lane-dense
        # f32 matmul.  The column mask kills the bias on lane-padding columns so
        # they can never spike (would otherwise corrupt q@k^T counts).
        # TODO(synk): on v6e/v7x this could run as bf16 hi/lo passes, but x is
        # real-valued so that is not bit-exact; kept in f32 for parity.
        qkv_pre = (jnp.dot(wqkv_ref[...], x_ref[...],
                           preferred_element_type=jnp.float32)
                   + bqkv_ref[...]) * mask_ref[...]                 # (3C, T*Np)

        # --- phase 2: q/k/v LIF recurrence (VPU only).  q/k/v share one stacked
        # (3C, Np) membrane (identical tau / threshold / reset).  Spikes are
        # streamed per timestep: v spikes straight to the attn output ref,
        # q/k/v spikes into a (T, 3C, Np) bf16 scratch for batched attention.
        v_qkv = jnp.zeros((3 * C, Np), jnp.float32)
        for t in range(T):                                          # static unroll
            sl = slice(t * Np, (t + 1) * Np)                        # 128-aligned
            v_qkv, s_qkv = _lif_step(v_qkv, qkv_pre[:, sl], 1.0)    # thr = 1.0
            spk_ref[t] = s_qkv                                      # (3C, Np) bf16
            out_attn_ref[:, sl] = s_qkv[2 * C:3 * C]                # module returns v spikes

        # --- phase 3: spike attention, re-associated to (q @ k^T) @ v and batched
        # over T so the MXU runs back-to-back instead of T tiny matmuls interleaved
        # with VPU work.  bf16 spike operands are exact; qk holds integer
        # coincidence counts and stays f32 for the second matmul (bf16 only exact
        # up to 256).  The 0.125 scale hits the small (C, C) qk, not (C, Np).
        # TODO(synk): per-chip narrow paths (int8 on v5e/v6e, fp8 on v7x) for the
        # spike operands are possible but not wired up here.
        spk = spk_ref[...]                                          # (T, 3C, Np) bf16
        q = spk[:, 0 * C:1 * C]
        k = spk[:, 1 * C:2 * C]
        v = spk[:, 2 * C:3 * C]
        qk = jnp.einsum("tcn,tdn->tcd", q, k,
                        preferred_element_type=jnp.float32)         # (T, C, C) counts
        att = jnp.einsum("tcd,tdn->tcn", qk * 0.125, v.astype(jnp.float32),
                         preferred_element_type=jnp.float32)        # (T, C, Np)

        # --- phase 4: attn LIF (thr = 0.5); spikes stream into the (C, T*Np)
        # bf16 scratch that feeds the proj matmul.
        v_att = jnp.zeros((C, Np), jnp.float32)
        for t in range(T):
            v_att, a_s = _lif_step(v_att, att[t], 0.5)
            s_tn_ref[:, t * Np:(t + 1) * Np] = a_s

        # --- phase 5: proj conv (+folded BN) over the whole attn-spike train as
        # hi/lo bf16 matmuls with f32 accumulation (exact on {0,1} spikes).
        a_all = s_tn_ref[...]                                       # (C, T*Np) bf16
        p_pre = (jnp.dot(wph_ref[...], a_all, preferred_element_type=jnp.float32)
                 + jnp.dot(wpl_ref[...], a_all, preferred_element_type=jnp.float32)
                 + bp_ref[...])                                     # (C, T*Np) f32

        # --- phase 6: proj_lif call #1.  a_all is fully consumed above, so the
        # same scratch is reused to hold the pass-1 spike train.
        v_p = jnp.zeros((C, Np), jnp.float32)
        for t in range(T):
            sl = slice(t * Np, (t + 1) * Np)
            v_p, s = _lif_step(v_p, p_pre[:, sl], 1.0)
            s_tn_ref[:, sl] = s

        # --- phase 7: proj_lif call #2 on its own spike output; membrane carried
        # over (same spikingjelly node instance, no reset between the two calls).
        # Residual is streamed: re-read the x slice per timestep (no slab kept live).
        # TODO(synk): if the reference resets the node between the two proj_lif
        # calls, restart v_p from zeros here instead of carrying it.
        for t in range(T):
            sl = slice(t * Np, (t + 1) * Np)
            v_p, s = _lif_step(v_p, s_tn_ref[:, sl], 1.0)
            out_x_ref[:, sl] = x_ref[:, sl] + s.astype(jnp.float32)

    return kernel


def block_forward(x, params):
    T, B, C, H, W = x.shape
    N = H * W
    Np = ((N + 127) // 128) * 128          # lane-pad so per-t slices are 128-aligned
    TNp = T * Np
    eps = 1e-5

    # layout plumbing: (T,B,C,H,W) -> (B, C, T*Np); per-t columns 128-aligned.
    xf = x.reshape(T, B, C, N).astype(jnp.float32)
    if Np != N:
        xf = jnp.pad(xf, ((0, 0), (0, 0), (0, 0), (0, Np - N)))
    x_kern = jnp.transpose(xf, (1, 2, 0, 3)).reshape(B, C, TNp)

    # column mask: 1 on real columns, 0 on lane padding.
    col_mask = jnp.tile((jnp.arange(Np) < N).astype(jnp.float32), (T,)).reshape(1, TNp)

    def fold_no_bias(w, bn):
        gamma, beta, mean, var = bn
        s = gamma / jnp.sqrt(var + eps)
        return s[:, None] * w, (beta - s * mean)[:, None]

    wq, bq = fold_no_bias(params["w_q"], params["bn_q"])
    wk, bk = fold_no_bias(params["w_k"], params["bn_k"])
    wv, bv = fold_no_bias(params["w_v"], params["bn_v"])
    w_qkv = jnp.concatenate([wq, wk, wv], axis=0)                  # (3C, C)
    b_qkv = jnp.concatenate([bq, bk, bv], axis=0)                  # (3C, 1)

    gamma_p, beta_p, mean_p, var_p = params["bn_p"]
    s_p = gamma_p / jnp.sqrt(var_p + eps)
    wp = s_p[:, None] * params["w_p"]                              # (C, C) folded conv+BN
    bp = (s_p * (params["b_p"] - mean_p) + beta_p)[:, None]        # (C, 1)
    # hi/lo bf16 split of the proj weight: two bf16 MXU passes with f32
    # accumulation — exact products against the {0,1} spike RHS.
    wp_hi = wp.astype(jnp.bfloat16)
    wp_lo = (wp - wp_hi.astype(jnp.float32)).astype(jnp.bfloat16)

    kernel = make_block_kernel(T, Np, C)

    slab_spec = pl.BlockSpec((None, C, TNp), lambda b: (b, 0, 0))
    rep = lambda shape: pl.BlockSpec(shape, lambda b: (0, 0))

    out_x_k, out_attn_k = pl.pallas_call(
        kernel,
        out_shape=(jax.ShapeDtypeStruct((B, C, TNp), jnp.float32),
                   jax.ShapeDtypeStruct((B, C, TNp), jnp.bfloat16)),  # spikes exact in bf16
        grid_spec=pltpu.PrefetchScalarGridSpec(
            num_scalar_prefetch=0,
            grid=(B,),
            in_specs=[slab_spec,                       # x slab
                      rep((1, TNp)),                   # column mask
                      rep((3 * C, C)),                 # folded q/k/v conv+BN weight (f32)
                      rep((3 * C, 1)),                 # folded q/k/v bias (f32)
                      rep((C, C)),                     # proj weight hi (bf16)
                      rep((C, C)),                     # proj weight lo (bf16)
                      rep((C, 1))],                    # folded proj bias (f32)
            out_specs=[slab_spec, slab_spec],
            scratch_shapes=[pltpu.VMEM((T, 3 * C, Np), jnp.bfloat16),  # q/k/v spikes
                            pltpu.VMEM((C, TNp), jnp.bfloat16)]),      # attn / proj-pass1 spikes
        compiler_params=pltpu.CompilerParams(
            dimension_semantics=("parallel",),         # B covers both v7x TCs when B >= 2
            vmem_limit_bytes=48 * 1024 * 1024),        # above 16/32 MiB default scoped limits
    )(x_kern, col_mask, w_qkv, b_qkv, wp_hi, wp_lo, bp)

    # back to the reference layouts (drop lane padding, restore f32 spike dtype)
    out_x = jnp.transpose(out_x_k.reshape(B, C, T, Np)[..., :N],
                          (2, 0, 1, 3)).reshape(T, B, C, H, W)
    out_attn = jnp.transpose(out_attn_k.reshape(B, C, T, Np)[..., :N],
                             (2, 0, 1, 3)).astype(jnp.float32)
    return out_x, out_attn


if __name__ == "__main__":
    key = jax.random.PRNGKey(0)
    T, B, C, H, W = 4, 2, 32, 8, 8   # dim = 32, num_heads = 8 (unused in forward)
    keys = jax.random.split(key, 10)
    x = jax.random.normal(keys[0], (T, B, C, H, W), jnp.float32)

    def bn_params(kk):
        k1, k2, k3, k4 = jax.random.split(kk, 4)
        gamma = 1.0 + 0.1 * jax.random.normal(k1, (C,), jnp.float32)
        beta = 0.1 * jax.random.normal(k2, (C,), jnp.float32)
        mean = 0.1 * jax.random.normal(k3, (C,), jnp.float32)
        var = jnp.abs(1.0 + 0.1 * jax.random.normal(k4, (C,), jnp.float32))
        return gamma, beta, mean, var

    params = {
        "w_q": 0.3 * jax.random.normal(keys[1], (C, C), jnp.float32),
        "w_k": 0.3 * jax.random.normal(keys[2], (C, C), jnp.float32),
        "w_v": 0.3 * jax.random.normal(keys[3], (C, C), jnp.float32),
        "w_p": 0.3 * jax.random.normal(keys[4], (C, C), jnp.float32),
        "b_p": 0.1 * jax.random.normal(keys[5], (C,), jnp.float32),
        "bn_q": bn_params(keys[6]),
        "bn_k": bn_params(keys[7]),
        "bn_v": bn_params(keys[8]),
        "bn_p": bn_params(keys[9]),
    }

    out_x, attn = jax.jit(block_forward)(x, params)
    jax.block_until_ready((out_x, attn))
    assert out_x.shape == (T, B, C, H, W) and out_x.dtype == jnp.float32
    assert attn.shape == (T, B, C, H * W) and attn.dtype == jnp.float32
    print("KERNEL_OK")
</pallas_src>

<mosaic_0001>
module attributes {stable_mosaic.version = 11 : i64} {
  func.func @kernel(%arg0: i32, %arg1: memref<1x32x512xf32, #tpu.memory_space<vmem>>, %arg2: memref<1x512xf32, #tpu.memory_space<vmem>>, %arg3: memref<96x32xf32, #tpu.memory_space<vmem>>, %arg4: memref<96x1xf32, #tpu.memory_space<vmem>>, %arg5: memref<32x32xbf16, #tpu.memory_space<vmem>>, %arg6: memref<32x32xbf16, #tpu.memory_space<vmem>>, %arg7: memref<32x1xf32, #tpu.memory_space<vmem>>, %arg8: memref<1x32x512xf32, #tpu.memory_space<vmem>>, %arg9: memref<1x32x512xbf16, #tpu.memory_space<vmem>>, %arg10: memref<4x96x128xbf16, #tpu.memory_space<vmem>>, %arg11: memref<32x512xbf16, #tpu.memory_space<vmem>>) attributes {dimension_semantics = [#tpu.dimension_semantics<parallel>], iteration_bounds = array<i64: 2>, scalar_prefetch = 0 : i64, scratch_operands = 2 : i64, tpu.core_type = #tpu.core_type<tc>, window_params = [{transform_indices = @transform_0, window_bounds = array<i64: 1, 32, 512>}, {pipeline_mode = #tpu.pipeline_mode<synchronous>, transform_indices = @transform_1, window_bounds = array<i64: 1, 512>}, {pipeline_mode = #tpu.pipeline_mode<synchronous>, transform_indices = @transform_2, window_bounds = array<i64: 96, 32>}, {pipeline_mode = #tpu.pipeline_mode<synchronous>, transform_indices = @transform_3, window_bounds = array<i64: 96, 1>}, {pipeline_mode = #tpu.pipeline_mode<synchronous>, transform_indices = @transform_4, window_bounds = array<i64: 32, 32>}, {pipeline_mode = #tpu.pipeline_mode<synchronous>, transform_indices = @transform_5, window_bounds = array<i64: 32, 32>}, {pipeline_mode = #tpu.pipeline_mode<synchronous>, transform_indices = @transform_6, window_bounds = array<i64: 32, 1>}, {transform_indices = @transform_7, window_bounds = array<i64: 1, 32, 512>}, {transform_indices = @transform_8, window_bounds = array<i64: 1, 32, 512>}]} {
    %c0 = arith.constant 0 : index
    %c0_0 = arith.constant 0 : index
    %0 = vector.load %arg3[%c0, %c0_0] : memref<96x32xf32, #tpu.memory_space<vmem>>, vector<96x32xf32>
    %c0_1 = arith.constant 0 : index
    %c0_2 = arith.constant 0 : index
    %c0_3 = arith.constant 0 : index
    %1 = vector.load %arg1[%c0_1, %c0_2, %c0_3] : memref<1x32x512xf32, #tpu.memory_space<vmem>>, vector<1x32x512xf32>
    %2 = vector.shape_cast %1 : vector<1x32x512xf32> to vector<32x512xf32>
    %cst = arith.constant dense<0.000000e+00> : vector<96x512xf32>
    %3 = tpu.matmul %0, %2, %cst {dimension_numbers = #tpu.dot_dimension_numbers<[1], [0], [0], [1], [0, 0, 1, 1], [], []>} : vector<96x32xf32>, vector<32x512xf32>, vector<96x512xf32> -> vector<96x512xf32>
    %c0_4 = arith.constant 0 : index
    %c0_5 = arith.constant 0 : index
    %4 = vector.load %arg4[%c0_4, %c0_5] : memref<96x1xf32, #tpu.memory_space<vmem>>, vector<96x1xf32>
    %5 = vector.broadcast %4 : vector<96x1xf32> to vector<96x512xf32>
    %6 = arith.addf %3, %5 : vector<96x512xf32>
    %c0_6 = arith.constant 0 : index
    %c0_7 = arith.constant 0 : index
    %7 = vector.load %arg2[%c0_6, %c0_7] : memref<1x512xf32, #tpu.memory_space<vmem>>, vector<1x512xf32>
    %8 = vector.broadcast %7 : vector<1x512xf32> to vector<96x512xf32>
    %9 = arith.mulf %6, %8 : vector<96x512xf32>
    %cst_8 = arith.constant 0.000000e+00 : f32
    %10 = vector.broadcast %cst_8 : f32 to vector<96x128xf32>
    %11 = vector.extract_strided_slice %9 {offsets = [0, 0], sizes = [96, 128], strides = [1, 1]} : vector<96x512xf32> to vector<96x128xf32>
    %12 = arith.subf %11, %10 : vector<96x128xf32>
    %cst_9 = arith.constant 5.000000e-01 : f32
    %13 = vector.broadcast %cst_9 : f32 to vector<96x128xf32>
    %14 = arith.mulf %12, %13 : vector<96x128xf32>
    %15 = arith.addf %10, %14 : vector<96x128xf32>
    %cst_10 = arith.constant 1.000000e+00 : f32
    %16 = vector.broadcast %cst_10 : f32 to vector<96x128xf32>
    %17 = arith.cmpf oge, %15, %16 : vector<96x128xf32>
    %cst_11 = arith.constant 1.000000e+00 : f32
    %cst_12 = arith.constant 0.000000e+00 : f32
    %18 = vector.broadcast %cst_11 : f32 to vector<96x128xf32>
    %19 = vector.broadcast %cst_12 : f32 to vector<96x128xf32>
    %20 = arith.select %17, %18, %19 : vector<96x128xi1>, vector<96x128xf32>
    %cst_13 = arith.constant 0.000000e+00 : f32
    %21 = vector.broadcast %cst_13 : f32 to vector<96x128xf32>
    %22 = arith.select %17, %21, %15 : vector<96x128xi1>, vector<96x128xf32>
    %23 = arith.truncf %20 : vector<96x128xf32> to vector<96x128xbf16>
    %c0_14 = arith.constant 0 : index
    %c0_15 = arith.constant 0 : index
    %c0_16 = arith.constant 0 : index
    %24 = vector.load %arg10[%c0_14, %c0_15, %c0_16] : memref<4x96x128xbf16, #tpu.memory_space<vmem>>, vector<1x96x128xbf16>
    %25 = vector.shape_cast %24 : vector<1x96x128xbf16> to vector<96x128xbf16>
    %26 = vector.shape_cast %23 : vector<96x128xbf16> to vector<1x96x128xbf16>
    tpu.vector_store %arg10[%c0_14, %c0_15, %c0_16], %26 {strides = array<i32>} : memref<4x96x128xbf16, #tpu.memory_space<vmem>>, vector<1x96x128xbf16>,
    %27 = vector.extract_strided_slice %23 {offsets = [64, 0], sizes = [32, 128], strides = [1, 1]} : vector<96x128xbf16> to vector<32x128xbf16>
    %c0_17 = arith.constant 0 : index
    %c0_18 = arith.constant 0 : index
    %c0_19 = arith.constant 0 : index
    %28 = vector.load %arg9[%c0_17, %c0_18, %c0_19] : memref<1x32x512xbf16, #tpu.memory_space<vmem>>, vector<1x32x128xbf16>
    %29 = vector.shape_cast %28 : vector<1x32x128xbf16> to vector<32x128xbf16>
    %30 = vector.shape_cast %27 : vector<32x128xbf16> to vector<1x32x128xbf16>
    tpu.vector_store %arg9[%c0_17, %c0_18, %c0_19], %30 {strides = array<i32>} : memref<1x32x512xbf16, #tpu.memory_space<vmem>>, vector<1x32x128xbf16>,
    %31 = vector.extract_strided_slice %9 {offsets = [0, 128], sizes = [96, 128], strides = [1, 1]} : vector<96x512xf32> to vector<96x128xf32>
    %32 = arith.subf %31, %22 : vector<96x128xf32>
    %cst_20 = arith.constant 5.000000e-01 : f32
    %33 = vector.broadcast %cst_20 : f32 to vector<96x128xf32>
    %34 = arith.mulf %32, %33 : vector<96x128xf32>
    %35 = arith.addf %22, %34 : vector<96x128xf32>
    %cst_21 = arith.constant 1.000000e+00 : f32
    %36 = vector.broadcast %cst_21 : f32 to vector<96x128xf32>
    %37 = arith.cmpf oge, %35, %36 : vector<96x128xf32>
    %cst_22 = arith.constant 1.000000e+00 : f32
    %cst_23 = arith.constant 0.000000e+00 : f32
    %38 = vector.broadcast %cst_22 : f32 to vector<96x128xf32>
    %39 = vector.broadcast %cst_23 : f32 to vector<96x128xf32>
    %40 = arith.select %37, %38, %39 : vector<96x128xi1>, vector<96x128xf32>
    %cst_24 = arith.constant 0.000000e+00 : f32
    %41 = vector.broadcast %cst_24 : f32 to vector<96x128xf32>
    %42 = arith.select %37, %41, %35 : vector<96x128xi1>, vector<96x128xf32>
    %43 = arith.truncf %40 : vector<96x128xf32> to vector<96x128xbf16>
    %c1 = arith.constant 1 : index
    %c0_25 = arith.constant 0 : index
    %c0_26 = arith.constant 0 : index
    %44 = vector.load %arg10[%c1, %c0_25, %c0_26] : memref<4x96x128xbf16, #tpu.memory_space<vmem>>, vector<1x96x128xbf16>
    %45 = vector.shape_cast %44 : vector<1x96x128xbf16> to vector<96x128xbf16>
    %46 = vector.shape_cast %43 : vector<96x128xbf16> to vector<1x96x128xbf16>
    tpu.vector_store %arg10[%c1, %c0_25, %c0_26], %46 {strides = array<i32>} : memref<4x96x128xbf16, #tpu.memory_space<vmem>>, vector<1x96x128xbf16>,
    %47 = vector.extract_strided_slice %43 {offsets = [64, 0], sizes = [32, 128], strides = [1, 1]} : vector<96x128xbf16> to vector<32x128xbf16>
    %c0_27 = arith.constant 0 : index
    %c0_28 = arith.constant 0 : index
    %c128 = arith.constant 128 : index
    %48 = vector.load %arg9[%c0_27, %c0_28, %c128] : memref<1x32x512xbf16, #tpu.memory_space<vmem>>, vector<1x32x128xbf16>
    %49 = vector.shape_cast %48 : vector<1x32x128xbf16> to vector<32x128xbf16>
    %50 = vector.shape_cast %47 : vector<32x128xbf16> to vector<1x32x128xbf16>
    tpu.vector_store %arg9[%c0_27, %c0_28, %c128], %50 {strides = array<i32>} : memref<1x32x512xbf16, #tpu.memory_space<vmem>>, vector<1x32x128xbf16>,
    %51 = vector.extract_strided_slice %9 {offsets = [0, 256], sizes = [96, 128], strides = [1, 1]} : vector<96x512xf32> to vector<96x128xf32>
    %52 = arith.subf %51, %42 : vector<96x128xf32>
    %cst_29 = arith.constant 5.000000e-01 : f32
    %53 = vector.broadcast %cst_29 : f32 to vector<96x128xf32>
    %54 = arith.mulf %52, %53 : vector<96x128xf32>
    %55 = arith.addf %42, %54 : vector<96x128xf32>
    %cst_30 = arith.constant 1.000000e+00 : f32
    %56 = vector.broadcast %cst_30 : f32 to vector<96x128xf32>
    %57 = arith.cmpf oge, %55, %56 : vector<96x128xf32>
    %cst_31 = arith.constant 1.000000e+00 : f32
    %cst_32 = arith.constant 0.000000e+00 : f32
    %58 = vector.broadcast %cst_31 : f32 to vector<96x128xf32>
    %59 = vector.broadcast %cst_32 : f32 to vector<96x128xf32>
    %60 = arith.select %57, %58, %59 : vector<96x128xi1>, vector<96x128xf32>
    %cst_33 = arith.constant 0.000000e+00 : f32
    %61 = vector.broadcast %cst_33 : f32 to vector<96x128xf32>
    %62 = arith.select %57, %61, %55 : vector<96x128xi1>, vector<96x128xf32>
    %63 = arith.truncf %60 : vector<96x128xf32> to vector<96x128xbf16>
    %c2 = arith.constant 2 : index
    %c0_34 = arith.constant 0 : index
    %c0_35 = arith.constant 0 : index
    %64 = vector.load %arg10[%c2, %c0_34, %c0_35] : memref<4x96x128xbf16, #tpu.memory_space<vmem>>, vector<1x96x128xbf16>
    %65 = vector.shape_cast %64 : vector<1x96x128xbf16> to vector<96x128xbf16>
    %66 = vector.shape_cast %63 : vector<96x128xbf16> to vector<1x96x128xbf16>
    tpu.vector_store %arg10[%c2, %c0_34, %c0_35], %66 {strides = array<i32>} : memref<4x96x128xbf16, #tpu.memory_space<vmem>>, vector<1x96x128xbf16>,
    %67 = vector.extract_strided_slice %63 {offsets = [64, 0], sizes = [32, 128], strides = [1, 1]} : vector<96x128xbf16> to vector<32x128xbf16>
    %c0_36 = arith.constant 0 : index
    %c0_37 = arith.constant 0 : index
    %c256 = arith.constant 256 : index
    %68 = vector.load %arg9[%c0_36, %c0_37, %c256] : memref<1x32x512xbf16, #tpu.memory_space<vmem>>, vector<1x32x128xbf16>
    %69 = vector.shape_cast %68 : vector<1x32x128xbf16> to vector<32x128xbf16>
    %70 = vector.shape_cast %67 : vector<32x128xbf16> to vector<1x32x128xbf16>
    tpu.vector_store %arg9[%c0_36, %c0_37, %c256], %70 {strides = array<i32>} : memref<1x32x512xbf16, #tpu.memory_space<vmem>>, vector<1x32x128xbf16>,
    %71 = vector.extract_strided_slice %9 {offsets = [0, 384], sizes = [96, 128], strides = [1, 1]} : vector<96x512xf32> to vector<96x128xf32>
    %72 = arith.subf %71, %62 : vector<96x128xf32>
    %cst_38 = arith.constant 5.000000e-01 : f32
    %73 = vector.broadcast %cst_38 : f32 to vector<96x128xf32>
    %74 = arith.mulf %72, %73 : vector<96x128xf32>
    %75 = arith.addf %62, %74 : vector<96x128xf32>
    %cst_39 = arith.constant 1.000000e+00 : f32
    %76 = vector.broadcast %cst_39 : f32 to vector<96x128xf32>
    %77 = arith.cmpf oge, %75, %76 : vector<96x128xf32>
    %cst_40 = arith.constant 1.000000e+00 : f32
    %cst_41 = arith.constant 0.000000e+00 : f32
    %78 = vector.broadcast %cst_40 : f32 to vector<96x128xf32>
    %79 = vector.broadcast %cst_41 : f32 to vector<96x128xf32>
    %80 = arith.select %77, %78, %79 : vector<96x128xi1>, vector<96x128xf32>
    %81 = arith.truncf %80 : vector<96x128xf32> to vector<96x128xbf16>
    %c3 = arith.constant 3 : index
    %c0_42 = arith.constant 0 : index
    %c0_43 = arith.constant 0 : index
    %82 = vector.load %arg10[%c3, %c0_42, %c0_43] : memref<4x96x128xbf16, #tpu.memory_space<vmem>>, vector<1x96x128xbf16>
    %83 = vector.shape_cast %82 : vector<1x96x128xbf16> to vector<96x128xbf16>
    %84 = vector.shape_cast %81 : vector<96x128xbf16> to vector<1x96x128xbf16>
    tpu.vector_store %arg10[%c3, %c0_42, %c0_43], %84 {strides = array<i32>} : memref<4x96x128xbf16, #tpu.memory_space<vmem>>, vector<1x96x128xbf16>,
    %85 = vector.extract_strided_slice %81 {offsets = [64, 0], sizes = [32, 128], strides = [1, 1]} : vector<96x128xbf16> to vector<32x128xbf16>
    %c0_44 = arith.constant 0 : index
    %c0_45 = arith.constant 0 : index
    %c384 = arith.constant 384 : index
    %86 = vector.load %arg9[%c0_44, %c0_45, %c384] : memref<1x32x512xbf16, #tpu.memory_space<vmem>>, vector<1x32x128xbf16>
    %87 = vector.shape_cast %86 : vector<1x32x128xbf16> to vector<32x128xbf16>
    %88 = vector.shape_cast %85 : vector<32x128xbf16> to vector<1x32x128xbf16>
    tpu.vector_store %arg9[%c0_44, %c0_45, %c384], %88 {strides = array<i32>} : memref<1x32x512xbf16, #tpu.memory_space<vmem>>, vector<1x32x128xbf16>,
    %c0_46 = arith.constant 0 : index
    %c0_47 = arith.constant 0 : index
    %c0_48 = arith.constant 0 : index
    %89 = vector.load %arg10[%c0_46, %c0_47, %c0_48] : memref<4x96x128xbf16, #tpu.memory_space<vmem>>, vector<4x96x128xbf16>
    %90 = vector.extract_strided_slice %89 {offsets = [0, 0, 0], sizes = [4, 32, 128], strides = [1, 1, 1]} : vector<4x96x128xbf16> to vector<4x32x128xbf16>
    %91 = vector.extract_strided_slice %89 {offsets = [0, 32, 0], sizes = [4, 32, 128], strides = [1, 1, 1]} : vector<4x96x128xbf16> to vector<4x32x128xbf16>
    %92 = vector.extract_strided_slice %89 {offsets = [0, 64, 0], sizes = [4, 32, 128], strides = [1, 1, 1]} : vector<4x96x128xbf16> to vector<4x32x128xbf16>
    "tpu.trace_start"() <{level = 10 : i32, message = "tcn,tdn->tcd"}> : () -> ()
    %cst_49 = arith.constant dense<0.000000e+00> : vector<4x32x32xf32>
    %93 = tpu.matmul %90, %91, %cst_49 {dimension_numbers = #tpu.dot_dimension_numbers<[2], [2], [1], [1], [0, 0, 0, 1, 1, 1], [0], [0]>} : vector<4x32x128xbf16>, vector<4x32x128xbf16>, vector<4x32x32xf32> -> vector<4x32x32xf32>
    "tpu.trace_stop"() : () -> ()
    %cst_50 = arith.constant 1.250000e-01 : f32
    %94 = vector.broadcast %cst_50 : f32 to vector<4x32x32xf32>
    %95 = arith.mulf %93, %94 : vector<4x32x32xf32>
    %96 = arith.extf %92 : vector<4x32x128xbf16> to vector<4x32x128xf32>
    "tpu.trace_start"() <{level = 10 : i32, message = "tcd,tdn->tcn"}> : () -> ()
    %cst_51 = arith.constant dense<0.000000e+00> : vector<4x32x128xf32>
    %97 = tpu.matmul %95, %96, %cst_51 {dimension_numbers = #tpu.dot_dimension_numbers<[2], [1], [1], [2], [0, 0, 0, 1, 1, 2], [0], [0]>} : vector<4x32x32xf32>, vector<4x32x128xf32>, vector<4x32x128xf32> -> vector<4x32x128xf32>
    %cst_52 = arith.constant 0.000000e+00 : f32
    "tpu.trace_stop"() : () -> ()
    %98 = vector.broadcast %cst_52 : f32 to vector<32x128xf32>
    %99 = vector.extract_strided_slice %97 {offsets = [0, 0, 0], sizes = [1, 32, 128], strides = [1, 1, 1]} : vector<4x32x128xf32> to vector<1x32x128xf32>
    %100 = vector.shape_cast %99 : vector<1x32x128xf32> to vector<32x128xf32>
    %101 = arith.subf %100, %98 : vector<32x128xf32>
    %cst_53 = arith.constant 5.000000e-01 : f32
    %102 = vector.broadcast %cst_53 : f32 to vector<32x128xf32>
    %103 = arith.mulf %101, %102 : vector<32x128xf32>
    %104 = arith.addf %98, %103 : vector<32x128xf32>
    %cst_54 = arith.constant 5.000000e-01 : f32
    %105 = vector.broadcast %cst_54 : f32 to vector<32x128xf32>
    %106 = arith.cmpf oge, %104, %105 : vector<32x128xf32>
    %cst_55 = arith.constant 1.000000e+00 : f32
    %cst_56 = arith.constant 0.000000e+00 : f32
    %107 = vector.broadcast %cst_55 : f32 to vector<32x128xf32>
    %108 = vector.broadcast %cst_56 : f32 to vector<32x128xf32>
    %109 = arith.select %106, %107, %108 : vector<32x128xi1>, vector<32x128xf32>
    %cst_57 = arith.constant 0.000000e+00 : f32
    %110 = vector.broadcast %cst_57 : f32 to vector<32x128xf32>
    %111 = arith.select %106, %110, %104 : vector<32x128xi1>, vector<32x128xf32>
    %112 = arith.truncf %109 : vector<32x128xf32> to vector<32x128xbf16>
    %c0_58 = arith.constant 0 : index
    %c0_59 = arith.constant 0 : index
    %113 = vector.load %arg11[%c0_58, %c0_59] : memref<32x512xbf16, #tpu.memory_space<vmem>>, vector<32x128xbf16>
    tpu.vector_store %arg11[%c0_58, %c0_59], %112 {strides = array<i32>} : memref<32x512xbf16, #tpu.memory_space<vmem>>, vector<32x128xbf16>,
    %114 = vector.extract_strided_slice %97 {offsets = [1, 0, 0], sizes = [1, 32, 128], strides = [1, 1, 1]} : vector<4x32x128xf32> to vector<1x32x128xf32>
    %115 = vector.shape_cast %114 : vector<1x32x128xf32> to vector<32x128xf32>
    %116 = arith.subf %115, %111 : vector<32x128xf32>
    %cst_60 = arith.constant 5.000000e-01 : f32
    %117 = vector.broadcast %cst_60 : f32 to vector<32x128xf32>
    %118 = arith.mulf %116, %117 : vector<32x128xf32>
    %119 = arith.addf %111, %118 : vector<32x128xf32>
    %cst_61 = arith.constant 5.000000e-01 : f32
    %120 = vector.broadcast %cst_61 : f32 to vector<32x128xf32>
    %121 = arith.cmpf oge, %119, %120 : vector<32x128xf32>
    %cst_62 = arith.constant 1.000000e+00 : f32
    %cst_63 = arith.constant 0.000000e+00 : f32
    %122 = vector.broadcast %cst_62 : f32 to vector<32x128xf32>
    %123 = vector.broadcast %cst_63 : f32 to vector<32x128xf32>
    %124 = arith.select %121, %122, %123 : vector<32x128xi1>, vector<32x128xf32>
    %cst_64 = arith.constant 0.000000e+00 : f32
    %125 = vector.broadcast %cst_64 : f32 to vector<32x128xf32>
    %126 = arith.select %121, %125, %119 : vector<32x128xi1>, vector<32x128xf32>
    %127 = arith.truncf %124 : vector<32x128xf32> to vector<32x128xbf16>
    %c0_65 = arith.constant 0 : index
    %c128_66 = arith.constant 128 : index
    %128 = vector.load %arg11[%c0_65, %c128_66] : memref<32x512xbf16, #tpu.memory_space<vmem>>, vector<32x128xbf16>
    tpu.vector_store %arg11[%c0_65, %c128_66], %127 {strides = array<i32>} : memref<32x512xbf16, #tpu.memory_space<vmem>>, vector<32x128xbf16>,
    %129 = vector.extract_strided_slice %97 {offsets = [2, 0, 0], sizes = [1, 32, 128], strides = [1, 1, 1]} : vector<4x32x128xf32> to vector<1x32x128xf32>
    %130 = vector.shape_cast %129 : vector<1x32x128xf32> to vector<32x128xf32>
    %131 = arith.subf %130, %126 : vector<32x128xf32>
    %cst_67 = arith.constant 5.000000e-01 : f32
    %132 = vector.broadcast %cst_67 : f32 to vector<32x128xf32>
    %133 = arith.mulf %131, %132 : vector<32x128xf32>
    %134 = arith.addf %126, %133 : vector<32x128xf32>
    %cst_68 = arith.constant 5.000000e-01 : f32
    %135 = vector.broadcast %cst_68 : f32 to vector<32x128xf32>
    %136 = arith.cmpf oge, %134, %135 : vector<32x128xf32>
    %cst_69 = arith.constant 1.000000e+00 : f32
    %cst_70 = arith.constant 0.000000e+00 : f32
    %137 = vector.broadcast %cst_69 : f32 to vector<32x128xf32>
    %138 = vector.broadcast %cst_70 : f32 to vector<32x128xf32>
    %139 = arith.select %136, %137, %138 : vector<32x128xi1>, vector<32x128xf32>
    %cst_71 = arith.constant 0.000000e+00 : f32
    %140 = vector.broadcast %cst_71 : f32 to vector<32x128xf32>
    %141 = arith.select %136, %140, %134 : vector<32x128xi1>, vector<32x128xf32>
    %142 = arith.truncf %139 : vector<32x128xf32> to vector<32x128xbf16>
    %c0_72 = arith.constant 0 : index
    %c256_73 = arith.constant 256 : index
    %143 = vector.load %arg11[%c0_72, %c256_73] : memref<32x512xbf16, #tpu.memory_space<vmem>>, vector<32x128xbf16>
    tpu.vector_store %arg11[%c0_72, %c256_73], %142 {strides = array<i32>} : memref<32x512xbf16, #tpu.memory_space<vmem>>, vector<32x128xbf16>,
    %144 = vector.extract_strided_slice %97 {offsets = [3, 0, 0], sizes = [1, 32, 128], strides = [1, 1, 1]} : vector<4x32x128xf32> to vector<1x32x128xf32>
    %145 = vector.shape_cast %144 : vector<1x32x128xf32> to vector<32x128xf32>
    %146 = arith.subf %145, %141 : vector<32x128xf32>
    %cst_74 = arith.constant 5.000000e-01 : f32
    %147 = vector.broadcast %cst_74 : f32 to vector<32x128xf32>
    %148 = arith.mulf %146, %147 : vector<32x128xf32>
    %149 = arith.addf %141, %148 : vector<32x128xf32>
    %cst_75 = arith.constant 5.000000e-01 : f32
    %150 = vector.broadcast %cst_75 : f32 to vector<32x128xf32>
    %151 = arith.cmpf oge, %149, %150 : vector<32x128xf32>
    %cst_76 = arith.constant 1.000000e+00 : f32
    %cst_77 = arith.constant 0.000000e+00 : f32
    %152 = vector.broadcast %cst_76 : f32 to vector<32x128xf32>
    %153 = vector.broadcast %cst_77 : f32 to vector<32x128xf32>
    %154 = arith.select %151, %152, %153 : vector<32x128xi1>, vector<32x128xf32>
    %155 = arith.truncf %154 : vector<32x128xf32> to vector<32x128xbf16>
    %c0_78 = arith.constant 0 : index
    %c384_79 = arith.constant 384 : index
    %156 = vector.load %arg11[%c0_78, %c384_79] : memref<32x512xbf16, #tpu.memory_space<vmem>>, vector<32x128xbf16>
    tpu.vector_store %arg11[%c0_78, %c384_79], %155 {strides = array<i32>} : memref<32x512xbf16, #tpu.memory_space<vmem>>, vector<32x128xbf16>,
    %c0_80 = arith.constant 0 : index
    %c0_81 = arith.constant 0 : index
    %157 = vector.load %arg11[%c0_80, %c0_81] : memref<32x512xbf16, #tpu.memory_space<vmem>>, vector<32x512xbf16>
    %c0_82 = arith.constant 0 : index
    %c0_83 = arith.constant 0 : index
    %158 = vector.load %arg5[%c0_82, %c0_83] : memref<32x32xbf16, #tpu.memory_space<vmem>>, vector<32x32xbf16>
    %cst_84 = arith.constant dense<0.000000e+00> : vector<32x512xf32>
    %159 = tpu.matmul %158, %157, %cst_84 {dimension_numbers = #tpu.dot_dimension_numbers<[1], [0], [0], [1], [0, 0, 1, 1], [], []>} : vector<32x32xbf16>, vector<32x512xbf16>, vector<32x512xf32> -> vector<32x512xf32>
    %c0_85 = arith.constant 0 : index
    %c0_86 = arith.constant 0 : index
    %160 = vector.load %arg6[%c0_85, %c0_86] : memref<32x32xbf16, #tpu.memory_space<vmem>>, vector<32x32xbf16>
    %cst_87 = arith.constant dense<0.000000e+00> : vector<32x512xf32>
    %161 = tpu.matmul %160, %157, %cst_87 {dimension_numbers = #tpu.dot_dimension_numbers<[1], [0], [0], [1], [0, 0, 1, 1], [], []>} : vector<32x32xbf16>, vector<32x512xbf16>, vector<32x512xf32> -> vector<32x512xf32>
    %162 = arith.addf %159, %161 : vector<32x512xf32>
    %c0_88 = arith.constant 0 : index
    %c0_89 = arith.constant 0 : index
    %163 = vector.load %arg7[%c0_88, %c0_89] : memref<32x1xf32, #tpu.memory_space<vmem>>, vector<32x1xf32>
    %164 = vector.broadcast %163 : vector<32x1xf32> to vector<32x512xf32>
    %165 = arith.addf %162, %164 : vector<32x512xf32>
    %cst_90 = arith.constant 0.000000e+00 : f32
    %166 = vector.broadcast %cst_90 : f32 to vector<32x128xf32>
    %167 = vector.extract_strided_slice %165 {offsets = [0, 0], sizes = [32, 128], strides = [1, 1]} : vector<32x512xf32> to vector<32x128xf32>
    %168 = arith.subf %167, %166 : vector<32x128xf32>
    %cst_91 = arith.constant 5.000000e-01 : f32
    %169 = vector.broadcast %cst_91 : f32 to vector<32x128xf32>
    %170 = arith.mulf %168, %169 : vector<32x128xf32>
    %171 = arith.addf %166, %170 : vector<32x128xf32>
    %cst_92 = arith.constant 1.000000e+00 : f32
    %172 = vector.broadcast %cst_92 : f32 to vector<32x128xf32>
    %173 = arith.cmpf oge, %171, %172 : vector<32x128xf32>
    %cst_93 = arith.constant 1.000000e+00 : f32
    %cst_94 = arith.constant 0.000000e+00 : f32
    %174 = vector.broadcast %cst_93 : f32 to vector<32x128xf32>
    %175 = vector.broadcast %cst_94 : f32 to vector<32x128xf32>
    %176 = arith.select %173, %174, %175 : vector<32x128xi1>, vector<32x128xf32>
    %cst_95 = arith.constant 0.000000e+00 : f32
    %177 = vector.broadcast %cst_95 : f32 to vector<32x128xf32>
    %178 = arith.select %173, %177, %171 : vector<32x128xi1>, vector<32x128xf32>
    %179 = arith.truncf %176 : vector<32x128xf32> to vector<32x128xbf16>
    %c0_96 = arith.constant 0 : index
    %c0_97 = arith.constant 0 : index
    %180 = vector.load %arg11[%c0_96, %c0_97] : memref<32x512xbf16, #tpu.memory_space<vmem>>, vector<32x128xbf16>
    tpu.vector_store %arg11[%c0_96, %c0_97], %179 {strides = array<i32>} : memref<32x512xbf16, #tpu.memory_space<vmem>>, vector<32x128xbf16>,
    %181 = vector.extract_strided_slice %165 {offsets = [0, 128], sizes = [32, 128], strides = [1, 1]} : vector<32x512xf32> to vector<32x128xf32>
    %182 = arith.subf %181, %178 : vector<32x128xf32>
    %cst_98 = arith.constant 5.000000e-01 : f32
    %183 = vector.broadcast %cst_98 : f32 to vector<32x128xf32>
    %184 = arith.mulf %182, %183 : vector<32x128xf32>
    %185 = arith.addf %178, %184 : vector<32x128xf32>
    %cst_99 = arith.constant 1.000000e+00 : f32
    %186 = vector.broadcast %cst_99 : f32 to vector<32x128xf32>
    %187 = arith.cmpf oge, %185, %186 : vector<32x128xf32>
    %cst_100 = arith.constant 1.000000e+00 : f32
    %cst_101 = arith.constant 0.000000e+00 : f32
    %188 = vector.broadcast %cst_100 : f32 to vector<32x128xf32>
    %189 = vector.broadcast %cst_101 : f32 to vector<32x128xf32>
    %190 = arith.select %187, %188, %189 : vector<32x128xi1>, vector<32x128xf32>
    %cst_102 = arith.constant 0.000000e+00 : f32
    %191 = vector.broadcast %cst_102 : f32 to vector<32x128xf32>
    %192 = arith.select %187, %191, %185 : vector<32x128xi1>, vector<32x128xf32>
    %193 = arith.truncf %190 : vector<32x128xf32> to vector<32x128xbf16>
    %c0_103 = arith.constant 0 : index
    %c128_104 = arith.constant 128 : index
    %194 = vector.load %arg11[%c0_103, %c128_104] : memref<32x512xbf16, #tpu.memory_space<vmem>>, vector<32x128xbf16>
    tpu.vector_store %arg11[%c0_103, %c128_104], %193 {strides = array<i32>} : memref<32x512xbf16, #tpu.memory_space<vmem>>, vector<32x128xbf16>,
    %195 = vector.extract_strided_slice %165 {offsets = [0, 256], sizes = [32, 128], strides = [1, 1]} : vector<32x512xf32> to vector<32x128xf32>
    %196 = arith.subf %195, %192 : vector<32x128xf32>
    %cst_105 = arith.constant 5.000000e-01 : f32
    %197 = vector.broadcast %cst_105 : f32 to vector<32x128xf32>
    %198 = arith.mulf %196, %197 : vector<32x128xf32>
    %199 = arith.addf %192, %198 : vector<32x128xf32>
    %cst_106 = arith.constant 1.000000e+00 : f32
    %200 = vector.broadcast %cst_106 : f32 to vector<32x128xf32>
    %201 = arith.cmpf oge, %199, %200 : vector<32x128xf32>
    %cst_107 = arith.constant 1.000000e+00 : f32
    %cst_108 = arith.constant 0.000000e+00 : f32
    %202 = vector.broadcast %cst_107 : f32 to vector<32x128xf32>
    %203 = vector.broadcast %cst_108 : f32 to vector<32x128xf32>
    %204 = arith.select %201, %202, %203 : vector<32x128xi1>, vector<32x128xf32>
    %cst_109 = arith.constant 0.000000e+00 : f32
    %205 = vector.broadcast %cst_109 : f32 to vector<32x128xf32>
    %206 = arith.select %201, %205, %199 : vector<32x128xi1>, vector<32x128xf32>
    %207 = arith.truncf %204 : vector<32x128xf32> to vector<32x128xbf16>
    %c0_110 = arith.constant 0 : index
    %c256_111 = arith.constant 256 : index
    %208 = vector.load %arg11[%c0_110, %c256_111] : memref<32x512xbf16, #tpu.memory_space<vmem>>, vector<32x128xbf16>
    tpu.vector_store %arg11[%c0_110, %c256_111], %207 {strides = array<i32>} : memref<32x512xbf16, #tpu.memory_space<vmem>>, vector<32x128xbf16>,
    %209 = vector.extract_strided_slice %165 {offsets = [0, 384], sizes = [32, 128], strides = [1, 1]} : vector<32x512xf32> to vector<32x128xf32>
    %210 = arith.subf %209, %206 : vector<32x128xf32>
    %cst_112 = arith.constant 5.000000e-01 : f32
    %211 = vector.broadcast %cst_112 : f32 to vector<32x128xf32>
    %212 = arith.mulf %210, %211 : vector<32x128xf32>
    %213 = arith.addf %206, %212 : vector<32x128xf32>
    %cst_113 = arith.constant 1.000000e+00 : f32
    %214 = vector.broadcast %cst_113 : f32 to vector<32x128xf32>
    %215 = arith.cmpf oge, %213, %214 : vector<32x128xf32>
    %cst_114 = arith.constant 1.000000e+00 : f32
    %cst_115 = arith.constant 0.000000e+00 : f32
    %216 = vector.broadcast %cst_114 : f32 to vector<32x128xf32>
    %217 = vector.broadcast %cst_115 : f32 to vector<32x128xf32>
    %218 = arith.select %215, %216, %217 : vector<32x128xi1>, vector<32x128xf32>
    %cst_116 = arith.constant 0.000000e+00 : f32
    %219 = vector.broadcast %cst_116 : f32 to vector<32x128xf32>
    %220 = arith.select %215, %219, %213 : vector<32x128xi1>, vector<32x128xf32>
    %221 = arith.truncf %218 : vector<32x128xf32> to vector<32x128xbf16>
    %c0_117 = arith.constant 0 : index
    %c384_118 = arith.constant 384 : index
    %222 = vector.load %arg11[%c0_117, %c384_118] : memref<32x512xbf16, #tpu.memory_space<vmem>>, vector<32x128xbf16>
    tpu.vector_store %arg11[%c0_117, %c384_118], %221 {strides = array<i32>} : memref<32x512xbf16, #tpu.memory_space<vmem>>, vector<32x128xbf16>,
    %c0_119 = arith.constant 0 : index
    %c0_120 = arith.constant 0 : index
    %223 = vector.load %arg11[%c0_119, %c0_120] : memref<32x512xbf16, #tpu.memory_space<vmem>>, vector<32x128xbf16>
    %224 = arith.extf %223 : vector<32x128xbf16> to vector<32x128xf32>
    %225 = arith.subf %224, %220 : vector<32x128xf32>
    %cst_121 = arith.constant 5.000000e-01 : f32
    %226 = vector.broadcast %cst_121 : f32 to vector<32x128xf32>
    %227 = arith.mulf %225, %226 : vector<32x128xf32>
    %228 = arith.addf %220, %227 : vector<32x128xf32>
    %cst_122 = arith.constant 1.000000e+00 : f32
    %229 = vector.broadcast %cst_122 : f32 to vector<32x128xf32>
    %230 = arith.cmpf oge, %228, %229 : vector<32x128xf32>
    %cst_123 = arith.constant 1.000000e+00 : f32
    %cst_124 = arith.constant 0.000000e+00 : f32
    %231 = vector.broadcast %cst_123 : f32 to vector<32x128xf32>
    %232 = vector.broadcast %cst_124 : f32 to vector<32x128xf32>
    %233 = arith.select %230, %231, %232 : vector<32x128xi1>, vector<32x128xf32>
    %cst_125 = arith.constant 0.000000e+00 : f32
    %234 = vector.broadcast %cst_125 : f32 to vector<32x128xf32>
    %235 = arith.select %230, %234, %228 : vector<32x128xi1>, vector<32x128xf32>
    %236 = arith.truncf %233 : vector<32x128xf32> to vector<32x128xbf16>
    %c0_126 = arith.constant 0 : index
    %c0_127 = arith.constant 0 : index
    %c0_128 = arith.constant 0 : index
    %237 = vector.load %arg1[%c0_126, %c0_127, %c0_128] : memref<1x32x512xf32, #tpu.memory_space<vmem>>, vector<1x32x128xf32>
    %238 = vector.shape_cast %237 : vector<1x32x128xf32> to vector<32x128xf32>
    %239 = arith.extf %236 : vector<32x128xbf16> to vector<32x128xf32>
    %240 = arith.addf %238, %239 : vector<32x128xf32>
    %c0_129 = arith.constant 0 : index
    %c0_130 = arith.constant 0 : index
    %c0_131 = arith.constant 0 : index
    %241 = vector.load %arg8[%c0_129, %c0_130, %c0_131] : memref<1x32x512xf32, #tpu.memory_space<vmem>>, vector<1x32x128xf32>
    %242 = vector.shape_cast %241 : vector<1x32x128xf32> to vector<32x128xf32>
    %243 = vector.shape_cast %240 : vector<32x128xf32> to vector<1x32x128xf32>
    tpu.vector_store %arg8[%c0_129, %c0_130, %c0_131], %243 {strides = array<i32>} : memref<1x32x512xf32, #tpu.memory_space<vmem>>, vector<1x32x128xf32>,
    %c0_132 = arith.constant 0 : index
    %c128_133 = arith.constant 128 : index
    %244 = vector.load %arg11[%c0_132, %c128_133] : memref<32x512xbf16, #tpu.memory_space<vmem>>, vector<32x128xbf16>
    %245 = arith.extf %244 : vector<32x128xbf16> to vector<32x128xf32>
    %246 = arith.subf %245, %235 : vector<32x128xf32>
    %cst_134 = arith.constant 5.000000e-01 : f32
    %247 = vector.broadcast %cst_134 : f32 to vector<32x128xf32>
    %248 = arith.mulf %246, %247 : vector<32x128xf32>
    %249 = arith.addf %235, %248 : vector<32x128xf32>
    %cst_135 = arith.constant 1.000000e+00 : f32
    %250 = vector.broadcast %cst_135 : f32 to vector<32x128xf32>
    %251 = arith.cmpf oge, %249, %250 : vector<32x128xf32>
    %cst_136 = arith.constant 1.000000e+00 : f32
    %cst_137 = arith.constant 0.000000e+00 : f32
    %252 = vector.broadcast %cst_136 : f32 to vector<32x128xf32>
    %253 = vector.broadcast %cst_137 : f32 to vector<32x128xf32>
    %254 = arith.select %251, %252, %253 : vector<32x128xi1>, vector<32x128xf32>
    %cst_138 = arith.constant 0.000000e+00 : f32
    %255 = vector.broadcast %cst_138 : f32 to vector<32x128xf32>
    %256 = arith.select %251, %255, %249 : vector<32x128xi1>, vector<32x128xf32>
    %257 = arith.truncf %254 : vector<32x128xf32> to vector<32x128xbf16>
    %c0_139 = arith.constant 0 : index
    %c0_140 = arith.constant 0 : index
    %c128_141 = arith.constant 128 : index
    %258 = vector.load %arg1[%c0_139, %c0_140, %c128_141] : memref<1x32x512xf32, #tpu.memory_space<vmem>>, vector<1x32x128xf32>
    %259 = vector.shape_cast %258 : vector<1x32x128xf32> to vector<32x128xf32>
    %260 = arith.extf %257 : vector<32x128xbf16> to vector<32x128xf32>
    %261 = arith.addf %259, %260 : vector<32x128xf32>
    %c0_142 = arith.constant 0 : index
    %c0_143 = arith.constant 0 : index
    %c128_144 = arith.constant 128 : index
    %262 = vector.load %arg8[%c0_142, %c0_143, %c128_144] : memref<1x32x512xf32, #tpu.memory_space<vmem>>, vector<1x32x128xf32>
    %263 = vector.shape_cast %262 : vector<1x32x128xf32> to vector<32x128xf32>
    %264 = vector.shape_cast %261 : vector<32x128xf32> to vector<1x32x128xf32>
    tpu.vector_store %arg8[%c0_142, %c0_143, %c128_144], %264 {strides = array<i32>} : memref<1x32x512xf32, #tpu.memory_space<vmem>>, vector<1x32x128xf32>,
    %c0_145 = arith.constant 0 : index
    %c256_146 = arith.constant 256 : index
    %265 = vector.load %arg11[%c0_145, %c256_146] : memref<32x512xbf16, #tpu.memory_space<vmem>>, vector<32x128xbf16>
    %266 = arith.extf %265 : vector<32x128xbf16> to vector<32x128xf32>
    %267 = arith.subf %266, %256 : vector<32x128xf32>
    %cst_147 = arith.constant 5.000000e-01 : f32
    %268 = vector.broadcast %cst_147 : f32 to vector<32x128xf32>
    %269 = arith.mulf %267, %268 : vector<32x128xf32>
    %270 = arith.addf %256, %269 : vector<32x128xf32>
    %cst_148 = arith.constant 1.000000e+00 : f32
    %271 = vector.broadcast %cst_148 : f32 to vector<32x128xf32>
    %272 = arith.cmpf oge, %270, %271 : vector<32x128xf32>
    %cst_149 = arith.constant 1.000000e+00 : f32
    %cst_150 = arith.constant 0.000000e+00 : f32
    %273 = vector.broadcast %cst_149 : f32 to vector<32x128xf32>
    %274 = vector.broadcast %cst_150 : f32 to vector<32x128xf32>
    %275 = arith.select %272, %273, %274 : vector<32x128xi1>, vector<32x128xf32>
    %cst_151 = arith.constant 0.000000e+00 : f32
    %276 = vector.broadcast %cst_151 : f32 to vector<32x128xf32>
    %277 = arith.select %272, %276, %270 : vector<32x128xi1>, vector<32x128xf32>
    %278 = arith.truncf %275 : vector<32x128xf32> to vector<32x128xbf16>
    %c0_152 = arith.constant 0 : index
    %c0_153 = arith.constant 0 : index
    %c256_154 = arith.constant 256 : index
    %279 = vector.load %arg1[%c0_152, %c0_153, %c256_154] : memref<1x32x512xf32, #tpu.memory_space<vmem>>, vector<1x32x128xf32>
    %280 = vector.shape_cast %279 : vector<1x32x128xf32> to vector<32x128xf32>
    %281 = arith.extf %278 : vector<32x128xbf16> to vector<32x128xf32>
    %282 = arith.addf %280, %281 : vector<32x128xf32>
    %c0_155 = arith.constant 0 : index
    %c0_156 = arith.constant 0 : index
    %c256_157 = arith.constant 256 : index
    %283 = vector.load %arg8[%c0_155, %c0_156, %c256_157] : memref<1x32x512xf32, #tpu.memory_space<vmem>>, vector<1x32x128xf32>
    %284 = vector.shape_cast %283 : vector<1x32x128xf32> to vector<32x128xf32>
    %285 = vector.shape_cast %282 : vector<32x128xf32> to vector<1x32x128xf32>
    tpu.vector_store %arg8[%c0_155, %c0_156, %c256_157], %285 {strides = array<i32>} : memref<1x32x512xf32, #tpu.memory_space<vmem>>, vector<1x32x128xf32>,
    %c0_158 = arith.constant 0 : index
    %c384_159 = arith.constant 384 : index
    %286 = vector.load %arg11[%c0_158, %c384_159] : memref<32x512xbf16, #tpu.memory_space<vmem>>, vector<32x128xbf16>
    %287 = arith.extf %286 : vector<32x128xbf16> to vector<32x128xf32>
    %288 = arith.subf %287, %277 : vector<32x128xf32>
    %cst_160 = arith.constant 5.000000e-01 : f32
    %289 = vector.broadcast %cst_160 : f32 to vector<32x128xf32>
    %290 = arith.mulf %288, %289 : vector<32x128xf32>
    %291 = arith.addf %277, %290 : vector<32x128xf32>
    %cst_161 = arith.constant 1.000000e+00 : f32
    %292 = vector.broadcast %cst_161 : f32 to vector<32x128xf32>
    %293 = arith.cmpf oge, %291, %292 : vector<32x128xf32>
    %cst_162 = arith.constant 1.000000e+00 : f32
    %cst_163 = arith.constant 0.000000e+00 : f32
    %294 = vector.broadcast %cst_162 : f32 to vector<32x128xf32>
    %295 = vector.broadcast %cst_163 : f32 to vector<32x128xf32>
    %296 = arith.select %293, %294, %295 : vector<32x128xi1>, vector<32x128xf32>
    %297 = arith.truncf %296 : vector<32x128xf32> to vector<32x128xbf16>
    %c0_164 = arith.constant 0 : index
    %c0_165 = arith.constant 0 : index
    %c384_166 = arith.constant 384 : index
    %298 = vector.load %arg1[%c0_164, %c0_165, %c384_166] : memref<1x32x512xf32, #tpu.memory_space<vmem>>, vector<1x32x128xf32>
    %299 = vector.shape_cast %298 : vector<1x32x128xf32> to vector<32x128xf32>
    %300 = arith.extf %297 : vector<32x128xbf16> to vector<32x128xf32>
    %301 = arith.addf %299, %300 : vector<32x128xf32>
    %c0_167 = arith.constant 0 : index
    %c0_168 = arith.constant 0 : index
    %c384_169 = arith.constant 384 : index
    %302 = vector.load %arg8[%c0_167, %c0_168, %c384_169] : memref<1x32x512xf32, #tpu.memory_space<vmem>>, vector<1x32x128xf32>
    %303 = vector.shape_cast %302 : vector<1x32x128xf32> to vector<32x128xf32>
    %304 = vector.shape_cast %301 : vector<32x128xf32> to vector<1x32x128xf32>
    tpu.vector_store %arg8[%c0_167, %c0_168, %c384_169], %304 {strides = array<i32>} : memref<1x32x512xf32, #tpu.memory_space<vmem>>, vector<1x32x128xf32>,
    return
  }
  func.func @transform_0(%arg0: i32) -> (i32, i32, i32) {
    %c0_i32 = arith.constant 0 : i32
    %c0_i32_0 = arith.constant 0 : i32
    %c0_i32_1 = arith.constant 0 : i32
    return %arg0, %c0_i32, %c0_i32_0 : i32, i32, i32
  }
  func.func @transform_1(%arg0: i32) -> (i32, i32) {
    %c0_i32 = arith.constant 0 : i32
    %c0_i32_0 = arith.constant 0 : i32
    %c0_i32_1 = arith.constant 0 : i32
    return %c0_i32, %c0_i32_0 : i32, i32
  }
  func.func @transform_2(%arg0: i32) -> (i32, i32) {
    %c0_i32 = arith.constant 0 : i32
    %c0_i32_0 = arith.constant 0 : i32
    %c0_i32_1 = arith.constant 0 : i32
    return %c0_i32, %c0_i32_0 : i32, i32
  }
  func.func @transform_3(%arg0: i32) -> (i32, i32) {
    %c0_i32 = arith.constant 0 : i32
    %c0_i32_0 = arith.constant 0 : i32
    %c0_i32_1 = arith.constant 0 : i32
    return %c0_i32, %c0_i32_0 : i32, i32
  }
  func.func @transform_4(%arg0: i32) -> (i32, i32) {
    %c0_i32 = arith.constant 0 : i32
    %c0_i32_0 = arith.constant 0 : i32
    %c0_i32_1 = arith.constant 0 : i32
    return %c0_i32, %c0_i32_0 : i32, i32
  }
  func.func @transform_5(%arg0: i32) -> (i32, i32) {
    %c0_i32 = arith.constant 0 : i32
    %c0_i32_0 = arith.constant 0 : i32
    %c0_i32_1 = arith.constant 0 : i32
    return %c0_i32, %c0_i32_0 : i32, i32
  }
  func.func @transform_6(%arg0: i32) -> (i32, i32) {
    %c0_i32 = arith.constant 0 : i32
    %c0_i32_0 = arith.constant 0 : i32
    %c0_i32_1 = arith.constant 0 : i32
    return %c0_i32, %c0_i32_0 : i32, i32
  }
  func.func @transform_7(%arg0: i32) -> (i32, i32, i32) {
    %c0_i32 = arith.constant 0 : i32
    %c0_i32_0 = arith.constant 0 : i32
    %c0_i32_1 = arith.constant 0 : i32
    return %arg0, %c0_i32, %c0_i32_0 : i32, i32, i32
  }
  func.func @transform_8(%arg0: i32) -> (i32, i32, i32) {
    %c0_i32 = arith.constant 0 : i32
    %c0_i32_0 = arith.constant 0 : i32
    %c0_i32_1 = arith.constant 0 : i32
    return %arg0, %c0_i32, %c0_i32_0 : i32, i32, i32
  }
}

</mosaic_0001>

<bundles_post_ra>
// kernel: tile.8
= control target key start
LH: loop header
LB: loop body
LE: loop exit
PB: predicated region body
PF: predicated region fallthrough
CT: control target
= control target key end

     0   :  { %s22_s0 = inlined_call_operand.vmem [shape: f32[128], index: 0, kind: input, shape index: {}]   ;;  %s23_s1 = inlined_call_operand.vmem [shape: f32[4,128], index: 1, kind: output, shape index: {}]  }
   0x1   :  { %v4_v0 = vld [vmem:[%s22_s0] ss:$0 sm:$0xff] }
   0x2   :  { %5 = vst [vmem:[%s23_s1] sm:$0xf] %v4_v0 }

// kernel: block_forward.1
= control target key start
LH: loop header
LB: loop body
LE: loop exit
PB: predicated region body
PF: predicated region fallthrough
CT: control target
= control target key end

     0   :  { %s2791_s27 = smov 0   ;;  %s3519_s0 = inlined_call_operand.vmem [shape: f32[2,32,512], index: 0, kind: input, shape index: {}]   ;;  %s3520_s1 = inlined_call_operand.vmem [shape: f32[1,512], index: 1, kind: input, shape index: {}]   ;;  %s3521_s2 = inlined_call_operand.vmem [shape: f32[96,32], index: 2, kind: input, shape index: {}]   ;;  %s3522_s3 = inlined_call_operand.vmem [shape: f32[96,1], index: 3, kind: input, shape index: {}]   ;;  %s3523_s4 = inlined_call_operand.vmem [shape: bf16[32,32], index: 4, kind: input, shape index: {}]   ;;  %s3524_s5 = inlined_call_operand.vmem [shape: bf16[32,32], index: 5, kind: input, shape index: {}]   ;;  %s3525_s6 = inlined_call_operand.vmem [shape: f32[32,1], index: 6, kind: input, shape index: {}]   ;;  %s3526_s7 = inlined_call_operand.vmem [shape: f32[2,32,512], index: 7, kind: output, shape index: {0}]   ;;  %s3527_s8 = inlined_call_operand.vmem [shape: bf16[2,32,512], index: 8, kind: output, shape index: {1}]  }
   0x1 LB: > { %s2338_s28 = sadd.s32 4294967295, %s2741_s27   ;;  %p2342_p0 = scmp.ge.s32.totalorder %s2741_s27, 1  ;;  %s2741_s27 = sphi %s2791_s27, %s19_s27  }
   0x2   : > { %p265_p1 = scmp.lt.s32.totalorder %s2741_s27, 3 }
   0x4   : > { %p266_p2 = pnand %p2342_p0, %p265_p1 }
   0x5   : > { %p304_p3 = scmp.lt.s32.totalorder (!%p266_p2), %s2338_s28, 1 }
   0x6   : > { %269 = sbr.rel (%p266_p2) target bundleno = 823 (0x337), region = 48 }
   0xb   : > { %v354_v0 = vld [vmem:[%s3522_s3 + $0x30] sm:$0xff]  ;;  %v2743_v1 = vmov 0   ;;  %v352_v2 = vld [vmem:[%s3522_s3 + $0x20] sm:$0xff]  ;;  %s3529_s28 = smov (!%p304_p3, %s2338_s28), 1  ;;  %vm420_vm0 = vcmask 261120   ;;  %v355_v20 = vld [vmem:[%s3522_s3 + $0x38] sm:$0xff] }
   0xc   : > { %2716 = vset.pattern.permute.xlu0 %v2743_v1  ;;  %2717 = vset.pattern.permute.xlu1 %v2743_v1  ;;  %s2543_s11 = sshll.u32 %s3529_s28, 7  ;;  %v320_v19 = vld [vmem:[%s3521_s2] sm:$0xff]  ;;  %v353_v21 = vld [vmem:[%s3522_s3 + $0x28] sm:$0xff]  ;;  %v350_v24 = vld [vmem:[%s3522_s3 + $0x10] sm:$0xff]  ;;  %s2545_s15 = sshll.u32 %s3529_s28, 6 }
   0xd   : > { %392 = vperm.xlu0 %2716, %v354_v0   ;;  %382 = vperm.xlu1 %2717, %v352_v2   ;;  %s2813_s14 = scalar_lea.vmem %s3519_s0, %s2543_s11  ;;  %v348_v22 = vld [vmem:[%s3522_s3] sm:$0xff]  ;;  %v321_v23 = vld [vmem:[%s3521_s2 + $0x8] sm:$0xff]  ;;  %v351_v25 = vld [vmem:[%s3522_s3 + $0x18] sm:$0xff]  ;;  %s3105_s18 = scalar_lea.vmem %s3527_s8, %s2545_s15 }
   0xe   : > { %2718 = vset.pattern.permute.xlu2 %v2743_v1  ;;  %v344_v3 = vld [vmem:[%s2813_s14 + $0x60] sm:$0xff]  ;;  %v345_v4 = vld [vmem:[%s2813_s14 + $0x68] sm:$0xff]  ;;  %v346_v5 = vld [vmem:[%s2813_s14 + $0x70] sm:$0xff]  ;;  %s3451_s9 = scalar_lea.vmem %s3526_s7, %s2543_s11 }
   0xf   : > { %469 = vmatpush.msra.mxu0 %v344_v3  ;;  %522 = vmatpush.msra.mxu1 %v345_v4  ;;  %v347_v6 = vld [vmem:[%s2813_s14 + $0x78] sm:$0xff]  ;;  %v340_v7 = vld [vmem:[%s2813_s14 + $0x40] sm:$0xff]  ;;  %v341_v8 = vld [vmem:[%s2813_s14 + $0x48] sm:$0xff] }
  0x10   : > { %575 = vmatpush.msra.mxu2 %v346_v5  ;;  %628 = vmatpush.msra.mxu3 %v347_v6  ;;  %v342_v9 = vld [vmem:[%s2813_s14 + $0x50] sm:$0xff]  ;;  %v343_v10 = vld [vmem:[%s2813_s14 + $0x58] sm:$0xff]  ;;  %v336_v11 = vld [vmem:[%s2813_s14 + $0x20] sm:$0xff] }
  0x11   : > { %470 = vmatpush.msra.mxu0 %v340_v7  ;;  %523 = vmatpush.msra.mxu1 %v341_v8  ;;  %v337_v12 = vld [vmem:[%s2813_s14 + $0x28] sm:$0xff]  ;;  %v338_v13 = vld [vmem:[%s2813_s14 + $0x30] sm:$0xff]  ;;  %v339_v14 = vld [vmem:[%s2813_s14 + $0x38] sm:$0xff] }
  0x12   : > { %576 = vmatpush.msra.mxu2 %v342_v9  ;;  %629 = vmatpush.msra.mxu3 %v343_v10  ;;  %v332_v15 = vld [vmem:[%s2813_s14] sm:$0xff]  ;;  %v333_v16 = vld [vmem:[%s2813_s14 + $0x8] sm:$0xff]  ;;  %v334_v17 = vld [vmem:[%s2813_s14 + $0x10] sm:$0xff] }
  0x13   : > { %471 = vmatpush.msra.mxu0 %v336_v11  ;;  %524 = vmatpush.msra.mxu1 %v337_v12  ;;  %v335_v18 = vld [vmem:[%s2813_s14 + $0x18] sm:$0xff]  ;;  %v349_v26 = vld [vmem:[%s3522_s3 + $0x8] sm:$0xff]  ;;  %v322_v27 = vld [vmem:[%s3521_s2 + $0x10] sm:$0xff] }
  0x14   : > { %577 = vmatpush.msra.mxu2 %v338_v13  ;;  %630 = vmatpush.msra.mxu3 %v339_v14  ;;  %v359_v28 = vld [vmem:[%s3522_s3 + $0x58] sm:$0xff]  ;;  %v1882_v30 = vld [vmem:[%s3525_s6] sm:$0xff]  ;;  %v1883_v34 = vld [vmem:[%s3525_s6 + $0x8] sm:$0xff]  ;;  %v2744_v14 = vmov 0.0  }
  0x15   : > { %472 = vmatpush.msra.mxu0 %v332_v15  ;;  %525 = vmatpush.msra.mxu1 %v333_v16  ;;  %v323_v29 = vld [vmem:[%s3521_s2 + $0x18] sm:$0xff]  ;;  %v356_v31 = vld [vmem:[%s3522_s3 + $0x40] sm:$0xff]  ;;  %v325_v35 = vld [vmem:[%s3521_s2 + $0x28] sm:$0xff] }
  0x16   : > { %578 = vmatpush.msra.mxu2 %v334_v17  ;;  %631 = vmatpush.msra.mxu3 %v335_v18  ;;  %v324_v32 = vld [vmem:[%s3521_s2 + $0x20] sm:$0xff]  ;;  %v1885_v33 = vld [vmem:[%s3525_s6 + $0x18] sm:$0xff]  ;;  %v326_v36 = vld [vmem:[%s3521_s2 + $0x30] sm:$0xff] }
  0x17   : > { %2349 = vmatmul.msk.f32.vlgmr.msra.gmra.mxu0 %vm420_vm0, %v320_v19  ;;  %2361 = vmatmul.msk.f32.vlgmr.msra.gmra.mxu1 %vm420_vm0, %v320_v19  ;;  %v358_v37 = vld [vmem:[%s3522_s3 + $0x50] sm:$0xff]  ;;  %v327_v38 = vld [vmem:[%s3521_s2 + $0x38] sm:$0xff]  ;;  %v357_v39 = vld [vmem:[%s3522_s3 + $0x48] sm:$0xff] }
  0x18   : > { %2373 = vmatmul.msk.f32.vlgmr.msra.gmra.mxu2 %vm420_vm0, %v320_v19  ;;  %2385 = vmatmul.msk.f32.vlgmr.msra.gmra.mxu3 %vm420_vm0, %v320_v19  ;;  %v328_v40 = vld [vmem:[%s3521_s2 + $0x40] sm:$0xff]  ;;  %v1884_v41 = vld [vmem:[%s3525_s6 + $0x10] sm:$0xff]  ;;  %v329_v42 = vld [vmem:[%s3521_s2 + $0x48] sm:$0xff] }
  0x19   : > { %397 = vperm.xlu0 %2716, %v355_v20   ;;  %387 = vperm.xlu1 %2717, %v353_v21   ;;  %v330_v43 = vld [vmem:[%s3521_s2 + $0x50] sm:$0xff]  ;;  %v331_v44 = vld [vmem:[%s3521_s2 + $0x58] sm:$0xff]  ;;  %v669_v47 = vld [vmem:[%s3520_s1] sm:$0xf] }
  0x1a   : > { %362 = vperm.xlu2 %2718, %v348_v22   ;;  %v2962_v48 = vperm.slane %v669_v47, 0  ;;  %v2964_v53 = vperm.slane %v669_v47, 1  ;;  %v2973_v63 = vperm.slane %v669_v47, 2  ;;  %v2984_v16 = vperm.slane %v669_v47, 3 }
  0x1f   : > { %2350 = vmatmul.msk.f32.gmra.mxu0 %vm420_vm0, %v321_v23  ;;  %2362 = vmatmul.msk.f32.gmra.mxu1 %vm420_vm0, %v321_v23 }
  0x20   : > { %2374 = vmatmul.msk.f32.gmra.mxu2 %vm420_vm0, %v321_v23  ;;  %2386 = vmatmul.msk.f32.gmra.mxu3 %vm420_vm0, %v321_v23 }
  0x21   : > { %372 = vperm.xlu0 %2716, %v350_v24   ;;  %377 = vperm.xlu1 %2717, %v351_v25  }
  0x22   : > { %367 = vperm.xlu2 %2718, %v349_v26  }
  0x27   : > { %2351 = vmatmul.msk.f32.gmra.mxu0 %vm420_vm0, %v322_v27  ;;  %2363 = vmatmul.msk.f32.gmra.mxu1 %vm420_vm0, %v322_v27 }
  0x28   : > { %2375 = vmatmul.msk.f32.gmra.mxu2 %vm420_vm0, %v322_v27  ;;  %2387 = vmatmul.msk.f32.gmra.mxu3 %vm420_vm0, %v322_v27 }
  0x29   : > { %417 = vperm.xlu0 %2716, %v359_v28   ;;  %402 = vperm.xlu1 %2717, %v356_v31  }
  0x2a   : > { %412 = vperm.xlu2 %2718, %v358_v37  }
  0x2f   : > { %2352 = vmatmul.msk.f32.gmra.mxu0 %vm420_vm0, %v323_v29  ;;  %2364 = vmatmul.msk.f32.gmra.mxu1 %vm420_vm0, %v323_v29 }
  0x30   : > { %2376 = vmatmul.msk.f32.gmra.mxu2 %vm420_vm0, %v323_v29  ;;  %2388 = vmatmul.msk.f32.gmra.mxu3 %vm420_vm0, %v323_v29 }
  0x31   : > { %1888 = vperm.xlu0 %2716, %v1882_v30   ;;  %1893 = vperm.xlu1 %2717, %v1883_v34  }
  0x32   : > { %407 = vperm.xlu2 %2718, %v357_v39  }
  0x37   : > { %2353 = vmatmul.msk.f32.gmra.mxu0 %vm420_vm0, %v324_v32  ;;  %2365 = vmatmul.msk.f32.gmra.mxu1 %vm420_vm0, %v324_v32 }
  0x38   : > { %2377 = vmatmul.msk.f32.gmra.mxu2 %vm420_vm0, %v324_v32  ;;  %2389 = vmatmul.msk.f32.gmra.mxu3 %vm420_vm0, %v324_v32 }
  0x39   : > { %1903 = vperm.xlu0 %2716, %v1885_v33  }
  0x3a   : > { %1898 = vperm.xlu2 %2718, %v1884_v41  }
  0x3f   : > { %2354 = vmatmul.msk.f32.gmra.mxu0 %vm420_vm0, %v325_v35  ;;  %2366 = vmatmul.msk.f32.gmra.mxu1 %vm420_vm0, %v325_v35 }
  0x40   : > { %2378 = vmatmul.msk.f32.gmra.mxu2 %vm420_vm0, %v325_v35  ;;  %2390 = vmatmul.msk.f32.gmra.mxu3 %vm420_vm0, %v325_v35 }
  0x47   : > { %2355 = vmatmul.msk.f32.gmra.mxu0 %vm420_vm0, %v326_v36  ;;  %2367 = vmatmul.msk.f32.gmra.mxu1 %vm420_vm0, %v326_v36 }
  0x48   : > { %2379 = vmatmul.msk.f32.gmra.mxu2 %vm420_vm0, %v326_v36  ;;  %2391 = vmatmul.msk.f32.gmra.mxu3 %vm420_vm0, %v326_v36 }
  0x4f   : > { %2356 = vmatmul.msk.f32.gmra.mxu0 %vm420_vm0, %v327_v38  ;;  %2368 = vmatmul.msk.f32.gmra.mxu1 %vm420_vm0, %v327_v38 }
  0x50   : > { %2380 = vmatmul.msk.f32.gmra.mxu2 %vm420_vm0, %v327_v38  ;;  %2392 = vmatmul.msk.f32.gmra.mxu3 %vm420_vm0, %v327_v38 }
  0x57   : > { %2357 = vmatmul.msk.f32.gmra.mxu0 %vm420_vm0, %v328_v40  ;;  %2369 = vmatmul.msk.f32.gmra.mxu1 %vm420_vm0, %v328_v40 }
  0x58   : > { %2381 = vmatmul.msk.f32.gmra.mxu2 %vm420_vm0, %v328_v40  ;;  %2393 = vmatmul.msk.f32.gmra.mxu3 %vm420_vm0, %v328_v40 }
  0x5f   : > { %2358 = vmatmul.msk.f32.gmra.mxu0 %vm420_vm0, %v329_v42  ;;  %2370 = vmatmul.msk.f32.gmra.mxu1 %vm420_vm0, %v329_v42 }
  0x60   : > { %2382 = vmatmul.msk.f32.gmra.mxu2 %vm420_vm0, %v329_v42  ;;  %2394 = vmatmul.msk.f32.gmra.mxu3 %vm420_vm0, %v329_v42 }
  0x67   : > { %2359 = vmatmul.msk.f32.gmra.mxu0 %vm420_vm0, %v330_v43  ;;  %2371 = vmatmul.msk.f32.gmra.mxu1 %vm420_vm0, %v330_v43 }
  0x68   : > { %2383 = vmatmul.msk.f32.gmra.mxu2 %vm420_vm0, %v330_v43  ;;  %2395 = vmatmul.msk.f32.gmra.mxu3 %vm420_vm0, %v330_v43 }
  0x6f   : > { %2360 = vmatmul.msk.f32.gmra.mxu0 %vm420_vm0, %v331_v44  ;;  %2372 = vmatmul.msk.f32.gmra.mxu1 %vm420_vm0, %v331_v44 }
  0x70   : > { %2384 = vmatmul.msk.f32.gmra.mxu2 %vm420_vm0, %v331_v44  ;;  %2396 = vmatmul.msk.f32.gmra.mxu3 %vm420_vm0, %v331_v44 }
  0x74   : > { %v363_v46 = vpop.permute.xlu2 %362 }
  0x7c   : > { %v368_v59 = vpop.permute.xlu2 %367 }
  0x7f   : > { %v2957_v45 = vpop.permute.xlu0 %392  ;;  %v2966_v54 = vpop.permute.xlu1 %382 }
  0x8b   : > { %v2969_v56 = vpop.permute.xlu0 %397  ;;  %v2976_v8 = vpop.permute.xlu1 %387 }
  0x93   : > { %v2980_v13 = vpop.permute.xlu0 %372  ;;  %v2993_v39 = vpop.permute.xlu1 %377 }
  0x94   : > { %v474_v49 = vpop.f32.mrf.mxu0  ;;  %v527_v50 = vpop.f32.mrf.mxu1 }
  0x95   : > { %v475_v51 = vadd.f32 %v474_v49, %v363_v46  ;;  %v528_v52 = vadd.f32 %v527_v50, %v363_v46 }
  0x97   : > { %v679_v55 = vmul.f32 %v2962_v48, %v475_v51  ;;  %v680_v58 = vmul.f32 %v2964_v53, %v528_v52 }
  0x99   : > { %v727_v57 = vmul.f32 0.5, %v679_v55 }
  0x9b   : > { %vm751_vm1 = vcmp.ge.f32.partialorder %v727_v57, 1.0  ;;  %v580_v60 = vpop.f32.mrf.mxu2  ;;  %v633_v61 = vpop.f32.mrf.mxu3 }
  0x9c   : > { %v775_v62 = vsel %vm751_vm1, 0.0, %v727_v57  ;;  %v477_v0 = vpop.f32.mrf.mxu0  ;;  %v530_v1 = vpop.f32.mrf.mxu1  ;;  %v581_v3 = vadd.f32 %v580_v60, %v363_v46  ;;  %v763_v15 = vsel %vm751_vm1, 1.0, %v2744_v14  ;;  %v634_v20 = vadd.f32 %v633_v61, %v363_v46 }
  0x9d   : > { %v815_v2 = vsub.f32 %v680_v58, %v775_v62  ;;  %v478_v4 = vadd.f32 %v477_v0, %v368_v59  ;;  %v531_v5 = vadd.f32 %v530_v1, %v368_v59 }
  0x9e   : > { %v681_v10 = vmul.f32 %v2973_v63, %v581_v3  ;;  %v682_v35 = vmul.f32 %v2984_v16, %v634_v20 }
  0x9f   : > { %v827_v6 = vmul.f32 0.5, %v815_v2  ;;  %v683_v7 = vmul.f32 %v2962_v48, %v478_v4  ;;  %v684_v12 = vmul.f32 %v2964_v53, %v531_v5 }
  0xa1   : > { %v839_v9 = vadd.f32 %v827_v6, %v775_v62  ;;  %v728_v11 = vmul.f32 0.5, %v683_v7 }
  0xa3   : > { %vm851_vm2 = vcmp.ge.f32.partialorder %v839_v9, 1.0  ;;  %vm752_vm3 = vcmp.ge.f32.partialorder %v728_v11, 1.0  ;;  %v583_v17 = vpop.f32.mrf.mxu2  ;;  %v636_v18 = vpop.f32.mrf.mxu3 }
  0xa4   : > { %v875_v19 = vsel %vm851_vm2, 0.0, %v839_v9  ;;  %v764_v21 = vsel %vm752_vm3, 1.0, %v2744_v14  ;;  %v776_v22 = vsel %vm752_vm3, 0.0, %v728_v11  ;;  %v480_v23 = vpop.f32.mrf.mxu0  ;;  %v533_v24 = vpop.f32.mrf.mxu1  ;;  %v584_v28 = vadd.f32 %v583_v17, %v368_v59 }
  0xa5   : > { %v916_v25 = vsub.f32 %v681_v10, %v875_v19  ;;  %v2575_v26 = vpack.c.bf16 %v764_v21, %v763_v15  ;;  %v816_v27 = vsub.f32 %v684_v12, %v776_v22  ;;  %v481_v29 = vadd.f32 %v480_v23, %v2980_v13 }
  0xa6   : > { %v534_v32 = vadd.f32 %v533_v24, %v2980_v13  ;;  %v685_v37 = vmul.f32 %v2973_v63, %v584_v28  ;;  %v863_v40 = vsel %vm851_vm2, 1.0, %v2744_v14  ;;  %v637_v49 = vadd.f32 %v636_v18, %v368_v59 }
  0xa7   : > { %v928_v30 = vmul.f32 0.5, %v916_v25  ;;  %2576 = vst [vmem:[#allocation2 + $0xb0] sm:$0xff] %v2575_v26   ;;  %v828_v31 = vmul.f32 0.5, %v816_v27  ;;  %v687_v33 = vmul.f32 %v2962_v48, %v481_v29 }
  0xa8   : > { %v688_v41 = vmul.f32 %v2964_v53, %v534_v32  ;;  %v686_v2 = vmul.f32 %v2984_v16, %v637_v49 }
  0xa9   : > { %v940_v34 = vadd.f32 %v928_v30, %v875_v19  ;;  %v840_v36 = vadd.f32 %v828_v31, %v776_v22  ;;  %v729_v38 = vmul.f32 0.5, %v687_v33 }
  0xab   : > { %vm952_vm4 = vcmp.ge.f32.partialorder %v940_v34, 1.0  ;;  %vm852_vm5 = vcmp.ge.f32.partialorder %v840_v36, 1.0  ;;  %v586_v42 = vpop.f32.mrf.mxu2  ;;  %v639_v43 = vpop.f32.mrf.mxu3  ;;  %vm753_vm6 = vcmp.ge.f32.partialorder %v729_v38, 1.0 }
  0xac   : > { %v976_v44 = vsel %vm952_vm4, 0.0, %v940_v34  ;;  %v864_v46 = vsel %vm852_vm5, 1.0, %v2744_v14  ;;  %v876_v47 = vsel %vm852_vm5, 0.0, %v840_v36  ;;  %v483_v50 = vpop.f32.mrf.mxu0  ;;  %v536_v51 = vpop.f32.mrf.mxu1  ;;  %v777_v58 = vsel %vm753_vm6, 0.0, %v729_v38 }
  0xad   : > { %v1017_v52 = vsub.f32 %v682_v35, %v976_v44  ;;  %v2593_v55 = vpack.c.bf16 %v864_v46, %v863_v40  ;;  %v917_v57 = vsub.f32 %v685_v37, %v876_v47  ;;  %v587_v60 = vadd.f32 %v586_v42, %v2980_v13 }
  0xae   : > { %v817_v0 = vsub.f32 %v688_v41, %v777_v58  ;;  %v484_v1 = vadd.f32 %v483_v50, %v2993_v39  ;;  %v537_v3 = vadd.f32 %v536_v51, %v2993_v39  ;;  %v964_v7 = vsel %vm952_vm4, 1.0, %v2744_v14 }
  0xaf   : > { %v1029_v61 = vmul.f32 0.5, %v1017_v52  ;;  %2594 = vst [vmem:[#allocation2 + $0x40] sm:$0xff] %v2593_v55   ;;  %v929_v62 = vmul.f32 0.5, %v917_v57  ;;  %v765_v9 = vsel %vm753_vm6, 1.0, %v2744_v14  ;;  %v689_v10 = vmul.f32 %v2973_v63, %v587_v60 }
  0xb0   : > { %v829_v5 = vmul.f32 0.5, %v817_v0  ;;  %v691_v6 = vmul.f32 %v2962_v48, %v484_v1  ;;  %v692_v15 = vmul.f32 %v2964_v53, %v537_v3  ;;  %v640_v21 = vadd.f32 %v639_v43, %v2980_v13 }
  0xb1   : > { %v1041_v59 = vadd.f32 %v1029_v61, %v976_v44  ;;  %v941_v4 = vadd.f32 %v929_v62, %v876_v47 }
  0xb2   : > { %v841_v11 = vadd.f32 %v829_v5, %v777_v58  ;;  %v730_v12 = vmul.f32 0.5, %v691_v6  ;;  %v690_v40 = vmul.f32 %v2984_v16, %v640_v21 }
  0xb3   : > { %vm953_vm7 = vcmp.ge.f32.partialorder %v941_v4, 1.0  ;;  %v589_v17 = vpop.f32.mrf.mxu2  ;;  %v642_v18 = vpop.f32.mrf.mxu3  ;;  %vm1053_vm8 = vcmp.ge.f32.partialorder %v1041_v59, 1.0 }
  0xb4   : > { %v965_v19 = vsel %vm953_vm7, 1.0, %v2744_v14  ;;  %v977_v20 = vsel %vm953_vm7, 0.0, %v941_v4  ;;  %v486_v22 = vpop.f32.mrf.mxu0  ;;  %v539_v23 = vpop.f32.mrf.mxu1  ;;  %vm853_vm9 = vcmp.ge.f32.partialorder %v841_v11, 1.0  ;;  %vm754_vm10 = vcmp.ge.f32.partialorder %v730_v12, 1.0 }
  0xb5   : > { %v2611_v24 = vpack.c.bf16 %v965_v19, %v964_v7  ;;  %v1018_v25 = vsub.f32 %v686_v2, %v977_v20  ;;  %v877_v26 = vsel %vm853_vm9, 0.0, %v841_v11  ;;  %v766_v27 = vsel %vm754_vm10, 1.0, %v2744_v14 }
  0xb6   : > { %v778_v28 = vsel %vm754_vm10, 0.0, %v730_v12  ;;  %v590_v29 = vadd.f32 %v589_v17, %v2993_v39  ;;  %v918_v31 = vsub.f32 %v689_v10, %v877_v26  ;;  %v2578_v32 = vpack.c.bf16 %v766_v27, %v765_v9 }
  0xb7   : > { %2612 = vst [vmem:[#allocation2 + $0x38] sm:$0xff] %v2611_v24   ;;  %v1030_v30 = vmul.f32 0.5, %v1018_v25  ;;  %v818_v33 = vsub.f32 %v692_v15, %v778_v28  ;;  %v487_v13 = vadd.f32 %v486_v22, %v2966_v54  ;;  %v540_v34 = vadd.f32 %v539_v23, %v2966_v54 }
  0xb8   : > { %v930_v36 = vmul.f32 0.5, %v918_v31  ;;  %2678 = vst [vmem:[#allocation2] sm:$0xff] %v2578_v32   ;;  %v1065_v38 = vsel %vm1053_vm8, 1.0, %v2744_v14  ;;  %v693_v44 = vmul.f32 %v2973_v63, %v590_v29  ;;  %v865_v50 = vsel %vm853_vm9, 1.0, %v2744_v14 }
  0xb9   : > { %v1042_v35 = vadd.f32 %v1030_v30, %v977_v20  ;;  %v830_v37 = vmul.f32 0.5, %v818_v33  ;;  %v695_v41 = vmul.f32 %v2962_v48, %v487_v13  ;;  %v696_v52 = vmul.f32 %v2964_v53, %v540_v34 }
  0xba   : > { %v942_v42 = vadd.f32 %v930_v36, %v877_v26  ;;  %v643_v1 = vadd.f32 %v642_v18, %v2993_v39 }
  0xbb   : > { %vm1054_vm11 = vcmp.ge.f32.partialorder %v1042_v35, 1.0  ;;  %v842_v43 = vadd.f32 %v830_v37, %v778_v28  ;;  %v592_v46 = vpop.f32.mrf.mxu2  ;;  %v645_v47 = vpop.f32.mrf.mxu3  ;;  %v731_v51 = vmul.f32 0.5, %v695_v41 }
  0xbc   : > { %v1066_v49 = vsel %vm1054_vm11, 1.0, %v2744_v14  ;;  %v489_v55 = vpop.f32.mrf.mxu0  ;;  %v542_v57 = vpop.f32.mrf.mxu1  ;;  %vm954_vm12 = vcmp.ge.f32.partialorder %v942_v42, 1.0  ;;  %v593_v5 = vadd.f32 %v592_v46, %v2966_v54  ;;  %v694_v39 = vmul.f32 %v2984_v16, %v643_v1 }
  0xbd   : > { %v2629_v58 = vpack.c.bf16 %v1066_v49, %v1065_v38  ;;  %vm854_vm13 = vcmp.ge.f32.partialorder %v842_v43, 1.0  ;;  %v490_v60 = vadd.f32 %v489_v55, %v2976_v8  ;;  %v978_v61 = vsel %vm954_vm12, 0.0, %v942_v42 }
  0xbe   : > { %v866_v62 = vsel %vm854_vm13, 1.0, %v2744_v14  ;;  %v878_v0 = vsel %vm854_vm13, 0.0, %v842_v43  ;;  %v1019_v2 = vsub.f32 %v690_v40, %v978_v61  ;;  %vm755_vm14 = vcmp.ge.f32.partialorder %v731_v51, 1.0 }
  0xbf   : > { %2630 = vst [vmem:[#allocation2 + $0x30] sm:$0xff] %v2629_v58   ;;  %v2596_v3 = vpack.c.bf16 %v866_v62, %v865_v50  ;;  %v919_v59 = vsub.f32 %v693_v44, %v878_v0  ;;  %v779_v4 = vsel %vm755_vm14, 0.0, %v731_v51  ;;  %v699_v10 = vmul.f32 %v2962_v48, %v490_v60 }
  0xc0   : > { %v1031_v6 = vmul.f32 0.5, %v1019_v2  ;;  %v819_v9 = vsub.f32 %v696_v52, %v779_v4  ;;  %v543_v11 = vadd.f32 %v542_v57, %v2976_v8  ;;  %v966_v20 = vsel %vm954_vm12, 1.0, %v2744_v14 }
  0xc1   : > { %2683 = vst [vmem:[#allocation2 + $0x78] sm:$0xff] %v2596_v3   ;;  %v931_v7 = vmul.f32 0.5, %v919_v59  ;;  %v732_v17 = vmul.f32 0.5, %v699_v10  ;;  %v697_v21 = vmul.f32 %v2973_v63, %v593_v5  ;;  %v646_v22 = vadd.f32 %v645_v47, %v2966_v54 }
  0xc2   : > { %v831_v15 = vmul.f32 0.5, %v819_v9  ;;  %v700_v23 = vmul.f32 %v2964_v53, %v543_v11  ;;  %v1043_v26 = vadd.f32 %v1031_v6, %v978_v61  ;;  %v767_v30 = vsel %vm755_vm14, 1.0, %v2744_v14 }
  0xc3   : > { %v943_v12 = vadd.f32 %v931_v7, %v878_v0  ;;  %v595_v18 = vpop.f32.mrf.mxu2  ;;  %v648_v19 = vpop.f32.mrf.mxu3  ;;  %vm756_vm1 = vcmp.ge.f32.partialorder %v732_v17, 1.0  ;;  %v698_v44 = vmul.f32 %v2984_v16, %v646_v22 }
  0xc4   : > { %v492_v24 = vpop.f32.mrf.mxu0  ;;  %v545_v25 = vpop.f32.mrf.mxu1  ;;  %v843_v27 = vadd.f32 %v831_v15, %v779_v4  ;;  %v768_v31 = vsel %vm756_vm1, 1.0, %v2744_v14  ;;  %v780_v54 = vsel %vm756_vm1, 0.0, %v732_v17  ;;  %v596_v36 = vadd.f32 %v595_v18, %v2976_v8 }
  0xc5   : > { %vm955_vm15 = vcmp.ge.f32.partialorder %v943_v12, 1.0  ;;  %v2581_v34 = vpack.c.bf16 %v768_v31, %v767_v30  ;;  %v820_v35 = vsub.f32 %v700_v23, %v780_v54  ;;  %vm1055_vm3 = vcmp.ge.f32.partialorder %v1043_v26, 1.0  ;;  %v3064_v17 = vpop.permute.xlu2 %412 }
  0xc6   : > { %v967_v28 = vsel %vm955_vm15, 1.0, %v2744_v14  ;;  %v979_v29 = vsel %vm955_vm15, 0.0, %v943_v12  ;;  %vm855_vm2 = vcmp.ge.f32.partialorder %v843_v27, 1.0  ;;  %v493_v41 = vadd.f32 %v492_v24, %v2957_v45 }
  0xc7   : > { %v2614_v32 = vpack.c.bf16 %v967_v28, %v966_v20  ;;  %v1020_v33 = vsub.f32 %v694_v39, %v979_v29  ;;  %v879_v13 = vsel %vm855_vm2, 0.0, %v843_v27  ;;  %2679 = vst [vmem:[#allocation2 + $0x10] sm:$0xff] %v2581_v34   ;;  %v832_v40 = vmul.f32 0.5, %v820_v35 }
  0xc8   : > { %v920_v38 = vsub.f32 %v697_v21, %v879_v13  ;;  %v649_v46 = vadd.f32 %v648_v19, %v2976_v8  ;;  %v1067_v50 = vsel %vm1055_vm3, 1.0, %v2744_v14  ;;  %v701_v52 = vmul.f32 %v2973_v63, %v596_v36 }
  0xc9   : > { %2688 = vst [vmem:[#allocation2 + $0x50] sm:$0xff] %v2614_v32   ;;  %v1032_v37 = vmul.f32 0.5, %v1020_v33  ;;  %v844_v51 = vadd.f32 %v832_v40, %v780_v54  ;;  %v703_v55 = vmul.f32 %v2962_v48, %v493_v41  ;;  %v546_v61 = vadd.f32 %v545_v25, %v2957_v45  ;;  %v403_v33 = vpop.permute.xlu1 %402 }
  0xca   : > { %v932_v43 = vmul.f32 0.5, %v920_v38  ;;  %v867_v8 = vsel %vm855_vm2, 1.0, %v2744_v14  ;;  %v702_v12 = vmul.f32 %v2984_v16, %v649_v46 }
  0xcb   : > { %v1044_v42 = vadd.f32 %v1032_v37, %v979_v29  ;;  %v598_v47 = vpop.f32.mrf.mxu2  ;;  %v651_v49 = vpop.f32.mrf.mxu3  ;;  %vm856_vm5 = vcmp.ge.f32.partialorder %v844_v51, 1.0  ;;  %v733_v1 = vmul.f32 0.5, %v703_v55  ;;  %v704_v9 = vmul.f32 %v2964_v53, %v546_v61 }
  0xcc   : > { %v495_v57 = vpop.f32.mrf.mxu0  ;;  %v548_v58 = vpop.f32.mrf.mxu1  ;;  %v944_v60 = vadd.f32 %v932_v43, %v879_v13  ;;  %v868_v3 = vsel %vm856_vm5, 1.0, %v2744_v14  ;;  %v880_v59 = vsel %vm856_vm5, 0.0, %v844_v51  ;;  %v599_v20 = vadd.f32 %v598_v47, %v2957_v45 }
  0xcd   : > { %vm1056_vm4 = vcmp.ge.f32.partialorder %v1044_v42, 1.0  ;;  %v496_v62 = vadd.f32 %v495_v57, %v2969_v56  ;;  %v2599_v5 = vpack.c.bf16 %v868_v3, %v867_v8  ;;  %v921_v6 = vsub.f32 %v701_v52, %v880_v59 }
  0xce   : > { %v1068_v0 = vsel %vm1056_vm4, 1.0, %v2744_v14  ;;  %vm956_vm6 = vcmp.ge.f32.partialorder %v944_v60, 1.0  ;;  %vm757_vm7 = vcmp.ge.f32.partialorder %v733_v1, 1.0  ;;  %v549_v15 = vadd.f32 %v548_v58, %v2969_v56 }
  0xcf   : > { %v2632_v2 = vpack.c.bf16 %v1068_v0, %v1067_v50  ;;  %v980_v4 = vsel %vm956_vm6, 0.0, %v944_v60  ;;  %v707_v10 = vmul.f32 %v2962_v48, %v496_v62  ;;  %2684 = vst [vmem:[#allocation2 + $0x88] sm:$0xff] %v2599_v5   ;;  %v933_v11 = vmul.f32 0.5, %v921_v6  ;;  %v3089_v6 = vpop.permute.xlu2 %407 }
  0xd0   : > { %v1021_v7 = vsub.f32 %v698_v44, %v980_v4  ;;  %v781_v39 = vsel %vm757_vm7, 0.0, %v733_v1  ;;  %v968_v24 = vsel %vm956_vm6, 1.0, %v2744_v14  ;;  %v769_v26 = vsel %vm757_vm7, 1.0, %v2744_v14 }
  0xd1   : > { %2693 = vst [vmem:[#allocation2 + $0x58] sm:$0xff] %v2632_v2   ;;  %v821_v19 = vsub.f32 %v704_v9, %v781_v39  ;;  %v734_v21 = vmul.f32 0.5, %v707_v10  ;;  %v945_v25 = vadd.f32 %v933_v11, %v880_v59  ;;  %v652_v27 = vadd.f32 %v651_v49, %v2957_v45 }
  0xd2   : > { %v1033_v18 = vmul.f32 0.5, %v1021_v7  ;;  %v708_v32 = vmul.f32 %v2964_v53, %v549_v15  ;;  %v705_v41 = vmul.f32 %v2973_v63, %v599_v20 }
  0xd3   : > { %v601_v22 = vpop.f32.mrf.mxu2  ;;  %v654_v23 = vpop.f32.mrf.mxu3  ;;  %v833_v31 = vmul.f32 0.5, %v821_v19  ;;  %vm758_vm8 = vcmp.ge.f32.partialorder %v734_v21, 1.0  ;;  %vm957_vm9 = vcmp.ge.f32.partialorder %v945_v25, 1.0  ;;  %v706_v49 = vmul.f32 %v2984_v16, %v652_v27 }
  0xd4   : > { %v498_v28 = vpop.f32.mrf.mxu0  ;;  %v551_v29 = vpop.f32.mrf.mxu1  ;;  %v1045_v30 = vadd.f32 %v1033_v18, %v980_v4  ;;  %v770_v54 = vsel %vm758_vm8, 1.0, %v2744_v14  ;;  %v782_v13 = vsel %vm758_vm8, 0.0, %v734_v21  ;;  %v969_v35 = vsel %vm957_vm9, 1.0, %v2744_v14 }
  0xd5   : > { %v499_v34 = vadd.f32 %v498_v28, %v403_v33  ;;  %v981_v36 = vsel %vm957_vm9, 0.0, %v945_v25  ;;  %v845_v37 = vadd.f32 %v833_v31, %v781_v39  ;;  %v602_v38 = vadd.f32 %v601_v22, %v2969_v56 }
  0xd6   : > { %v2617_v45 = vpack.c.bf16 %v969_v35, %v968_v24  ;;  %v1022_v40 = vsub.f32 %v702_v12, %v981_v36  ;;  %v2584_v42 = vpack.c.bf16 %v770_v54, %v769_v26  ;;  %vm1057_vm10 = vcmp.ge.f32.partialorder %v1045_v30, 1.0 }
  0xd7   : > { %vm857_vm11 = vcmp.ge.f32.partialorder %v845_v37, 1.0  ;;  %v822_v43 = vsub.f32 %v708_v32, %v782_v13  ;;  %v552_v44 = vadd.f32 %v551_v29, %v403_v33  ;;  %v711_v50 = vmul.f32 %v2962_v48, %v499_v34 }
  0xd8   : > { %2689 = vst [vmem:[#allocation2 + $0x70] sm:$0xff] %v2617_v45   ;;  %v1034_v46 = vmul.f32 0.5, %v1022_v40  ;;  %v881_v47 = vsel %vm857_vm11, 0.0, %v845_v37  ;;  %v709_v55 = vmul.f32 %v2973_v63, %v602_v38  ;;  %v655_v57 = vadd.f32 %v654_v23, %v2969_v56 }
  0xd9   : > { %v922_v51 = vsub.f32 %v705_v41, %v881_v47  ;;  %2680 = vst [vmem:[#allocation2 + $0x48] sm:$0xff] %v2584_v42   ;;  %v834_v52 = vmul.f32 0.5, %v822_v43  ;;  %v1069_v61 = vsel %vm1057_vm10, 1.0, %v2744_v14  ;;  %v869_v0 = vsel %vm857_vm11, 1.0, %v2744_v14 }
  0xda   : > { %v1046_v62 = vadd.f32 %v1034_v46, %v981_v36  ;;  %v3086_v2 = vmul.f32 0.5, %v711_v50  ;;  %v712_v5 = vmul.f32 %v2964_v53, %v552_v44  ;;  %v710_v29 = vmul.f32 %v2984_v16, %v655_v57 }
  0xdb   : > { %v604_v58 = vpop.f32.mrf.mxu2  ;;  %v657_v60 = vpop.f32.mrf.mxu3  ;;  %v934_v3 = vmul.f32 0.5, %v922_v51  ;;  %v846_v59 = vadd.f32 %v834_v52, %v782_v13 }
  0xdc   : > { %v501_v8 = vpop.f32.mrf.mxu0  ;;  %v554_v1 = vpop.f32.mrf.mxu1  ;;  %v605_v4 = vadd.f32 %v604_v58, %v403_v33  ;;  %vm1058_vm12 = vcmp.ge.f32.partialorder %v1046_v62, 1.0  ;;  %v658_v56 = vadd.f32 %v657_v60, %v403_v33  ;;  %vm759_vm13 = vcmp.ge.f32.partialorder %v3086_v2, 1.0 }
  0xdd   : > { %v502_v7 = vadd.f32 %v501_v8, %v3089_v6  ;;  %v1070_v9 = vsel %vm1058_vm12, 1.0, %v2744_v14  ;;  %v946_v10 = vadd.f32 %v934_v3, %v881_v47  ;;  %vm858_vm14 = vcmp.ge.f32.partialorder %v846_v59, 1.0 }
  0xde   : > { %v771_v11 = vsel %vm759_vm13, 1.0, %v2744_v14  ;;  %v2635_v12 = vpack.c.bf16 %v1070_v9, %v1069_v61  ;;  %v870_v39 = vsel %vm858_vm14, 1.0, %v2744_v14  ;;  %v882_v15 = vsel %vm858_vm14, 0.0, %v846_v59  ;;  %v2548_v61 = vld [vmem:[#allocation2 + $0x10] sm:$0xff] }
  0xdf   : > { %v783_v18 = vsel %vm759_vm13, 0.0, %v3086_v2  ;;  %vm958_vm15 = vcmp.ge.f32.partialorder %v946_v10, 1.0  ;;  %v2602_v19 = vpack.c.bf16 %v870_v39, %v869_v0  ;;  %v923_v20 = vsub.f32 %v709_v55, %v882_v15  ;;  %v3139_v0 = vpop.permute.xlu0 %417 }
  0xe0   : > { %v795_v21 = vpack.c.bf16 %v771_v11, %v771_v11  ;;  %2694 = vst [vmem:[#allocation2 + $0x80] sm:$0xff] %v2635_v12   ;;  %v982_v22 = vsel %vm958_vm15, 0.0, %v946_v10  ;;  %v823_v23 = vsub.f32 %v712_v5, %v783_v18  ;;  %v555_v24 = vadd.f32 %v554_v1, %v3089_v6  ;;  %v2549_v26 = vld [vmem:[#allocation2 + $0x48] sm:$0xff] }
  0xe1   : > { %v715_v25 = vmul.f32 %v2962_v48, %v502_v7  ;;  %v1023_v27 = vsub.f32 %v706_v49, %v982_v22  ;;  %2685 = vst [vmem:[#allocation2 + $0x90] sm:$0xff] %v2602_v19   ;;  %v935_v28 = vmul.f32 0.5, %v923_v20  ;;  %v713_v30 = vmul.f32 %v2973_v63, %v605_v4  ;;  %1184 = vmatpush.bf16.xpose.msrb.mxu0 %v2549_v26 }
  0xe2   : > { %811 = vst [vmem:[%s3105_s18] sm:$0xf] %v795_v21  ;;  %v835_v31 = vmul.f32 0.5, %v823_v23  ;;  %v970_v13 = vsel %vm958_vm15, 1.0, %v2744_v14  ;;  %v3118_v36 = vmul.f32 %v2984_v16, %v658_v56  ;;  %v716_v45 = vmul.f32 %v2964_v53, %v555_v24 }
  0xe3   : > { %v3113_v32 = vmul.f32 0.5, %v715_v25  ;;  %v1035_v34 = vmul.f32 0.5, %v1023_v27  ;;  %v947_v35 = vadd.f32 %v935_v28, %v882_v15  ;;  %v607_v37 = vpop.f32.mrf.mxu2  ;;  %v660_v55 = vpop.f32.mrf.mxu3  ;;  %v2546_v28 = vld [vmem:[#allocation2 + $0xb0] sm:$0xff] }
  0xe4   : > { %v504_v33 = vpop.f32.mrf.mxu0  ;;  %v557_v54 = vpop.f32.mrf.mxu1  ;;  %v3120_v38 = vadd.f32 %v835_v31, %v783_v18  ;;  %v608_v52 = vadd.f32 %v607_v37, %v3089_v6  ;;  %v661_v56 = vadd.f32 %v660_v55, %v3089_v6 }
  0xe5   : > { %vm760_vm1 = vcmp.ge.f32.partialorder %v3113_v32, 1.0  ;;  %v505_v40 = vadd.f32 %v504_v33, %v3064_v17  ;;  %v1047_v41 = vadd.f32 %v1035_v34, %v982_v22  ;;  %vm959_vm2 = vcmp.ge.f32.partialorder %v947_v35, 1.0  ;;  %v2552_v33 = vld [vmem:[#allocation2 + $0x88] sm:$0xff] }
  0xe6   : > { %v772_v42 = vsel %vm760_vm1, 1.0, %v2744_v14  ;;  %v784_v43 = vsel %vm760_vm1, 0.0, %v3113_v32  ;;  %v971_v44 = vsel %vm959_vm2, 1.0, %v2744_v14  ;;  %v983_v46 = vsel %vm959_vm2, 0.0, %v947_v35 }
  0xe7   : > { %vm859_vm3 = vcmp.ge.f32.partialorder %v3120_v38, 1.0  ;;  %v796_v47 = vpack.c.bf16 %v772_v42, %v772_v42  ;;  %v2620_v49 = vpack.c.bf16 %v971_v44, %v970_v13  ;;  %v1024_v50 = vsub.f32 %v710_v29, %v983_v46 }
  0xe8   : > { %v883_v51 = vsel %vm859_vm3, 0.0, %v3120_v38  ;;  %v824_v58 = vsub.f32 %v716_v45, %v784_v43  ;;  %v558_v60 = vadd.f32 %v557_v54, %v3064_v17  ;;  %v2553_v62 = vld [vmem:[#allocation2 + $0x90] sm:$0xff]  ;;  %vm1059_vm4 = vcmp.ge.f32.partialorder %v1047_v41, 1.0  ;;  %v2559_v38 = vld [vmem:[#allocation2 + $0x58] sm:$0xff] }
  0xe9   : > { %v924_v57 = vsub.f32 %v713_v30, %v883_v51  ;;  %812 = vst [vmem:[%s3105_s18 + $0x10] sm:$0xf] %v796_v47  ;;  %v1036_v8 = vmul.f32 0.5, %v1024_v50  ;;  %v871_v1 = vsel %vm859_vm3, 1.0, %v2744_v14  ;;  %v719_v3 = vmul.f32 %v2962_v48, %v505_v40  ;;  %1185 = vmatpush.bf16.xpose.msrb.mxu0 %v2548_v61  ;;  %1227 = vmatpush.bf16.xpose.msrb.mxu1 %v2553_v62 }
  0xea   : > { %2690 = vst [vmem:[#allocation2 + $0xa0] sm:$0xff] %v2620_v49   ;;  %v836_v4 = vmul.f32 0.5, %v824_v58  ;;  %v895_v5 = vpack.c.bf16 %v871_v1, %v871_v1  ;;  %v717_v11 = vmul.f32 %v2973_v63, %v608_v52  ;;  %v1071_v15 = vsel %vm1059_vm4, 1.0, %v2744_v14 }
  0xeb   : > { %v936_v59 = vmul.f32 0.5, %v924_v57  ;;  %v1048_v10 = vadd.f32 %v1036_v8, %v983_v46  ;;  %v3147_v12 = vmul.f32 0.5, %v719_v3  ;;  %v720_v6 = vmul.f32 %v2964_v53, %v558_v60  ;;  %v610_v20 = vpop.f32.mrf.mxu2  ;;  %v2550_v8 = vld [vmem:[#allocation2 + $0x40] sm:$0xff] }
  0xec   : > { %v507_v7 = vpop.f32.mrf.mxu0  ;;  %v560_v9 = vpop.f32.mrf.mxu1  ;;  %v3154_v19 = vadd.f32 %v836_v4, %v784_v43  ;;  %912 = vst [vmem:[%s3105_s18 + $0x4] sm:$0xf] %v895_v5  ;;  %v718_v42 = vmul.f32 %v2984_v16, %v661_v56  ;;  %v611_v50 = vadd.f32 %v610_v20, %v3064_v17  ;;  %v2556_v4 = vld [vmem:[#allocation2 + $0x70] sm:$0xff] }
  0xed   : > { %v508_v39 = vadd.f32 %v507_v7, %v3139_v0  ;;  %v3152_v18 = vadd.f32 %v936_v59, %v883_v51  ;;  %vm1060_vm5 = vcmp.ge.f32.partialorder %v1048_v10, 1.0  ;;  %vm761_vm6 = vcmp.ge.f32.partialorder %v3147_v12, 1.0  ;;  %v663_v51 = vpop.f32.mrf.mxu3 }
  0xee   : > { %v561_v22 = vadd.f32 %v560_v9, %v3139_v0  ;;  %v1072_v23 = vsel %vm1060_vm5, 1.0, %v2744_v14  ;;  %vm860_vm8 = vcmp.ge.f32.partialorder %v3154_v19, 1.0  ;;  %v773_v24 = vsel %vm761_vm6, 1.0, %v2744_v14 }
  0xef   : > { %v723_v21 = vmul.f32 %v2962_v48, %v508_v39  ;;  %vm960_vm7 = vcmp.ge.f32.partialorder %v3152_v18, 1.0  ;;  %v2638_v25 = vpack.c.bf16 %v1072_v23, %v1071_v15  ;;  %v872_v48 = vsel %vm860_vm8, 1.0, %v2744_v14 }
  0xf0   : > { %v984_v26 = vsel %vm960_vm7, 0.0, %v3152_v18  ;;  %v884_v27 = vsel %vm860_vm8, 0.0, %v3154_v19  ;;  %v896_v30 = vpack.c.bf16 %v872_v48, %v872_v48  ;;  %v972_v13 = vsel %vm960_vm7, 1.0, %v2744_v14  ;;  %1186 = vmatmul.bf16.vlgmr.msrb.gmra.mxu0 %v2546_v28 }
  0xf1   : > { %v1025_v29 = vsub.f32 %v3118_v36, %v984_v26  ;;  %v925_v31 = vsub.f32 %v717_v11, %v884_v27  ;;  %v2557_v54 = vld [vmem:[#allocation2 + $0xa0] sm:$0xff]  ;;  %2695 = vst [vmem:[#allocation2 + $0xb8] sm:$0xff] %v2638_v25   ;;  %v785_v34 = vsel %vm761_vm6, 0.0, %v3147_v12  ;;  %v797_v35 = vpack.c.bf16 %v773_v24, %v773_v24  ;;  %1228 = vmatpush.bf16.xpose.msrb.mxu1 %v2552_v33 }
  0xf2   : > { %v738_v37 = vmul.f32 0.5, %v723_v21  ;;  %v996_v40 = vpack.c.bf16 %v972_v13, %v972_v13  ;;  %v825_v41 = vsub.f32 %v720_v6, %v785_v34  ;;  %1270 = vmatpush.bf16.xpose.msrb.mxu2 %v2557_v54  ;;  %913 = vst [vmem:[%s3105_s18 + $0x14] sm:$0xf] %v896_v30  ;;  %v724_v43 = vmul.f32 %v2964_v53, %v561_v22  ;;  %v2554_v30 = vld [vmem:[#allocation2 + $0x38] sm:$0xff]  ;;  %v2560_v33 = vld [vmem:[#allocation2 + $0x80] sm:$0xff] }
  0xf3   : > { %v1037_v36 = vmul.f32 0.5, %v1025_v29  ;;  %v937_v45 = vmul.f32 0.5, %v925_v31  ;;  %813 = vst [vmem:[%s3105_s18 + $0x20] sm:$0xf] %v797_v35  ;;  %v613_v62 = vpop.f32.mrf.mxu2  ;;  %v721_v56 = vmul.f32 %v2973_v63, %v611_v50  ;;  %v2745_v21 = vmov 1.0   ;;  %v2547_v29 = vld [vmem:[#allocation2] sm:$0xff] }
  0xf4   : > { %vm762_vm9 = vcmp.ge.f32.partialorder %v738_v37, 1.0  ;;  %1013 = vst [vmem:[%s3105_s18 + $0x8] sm:$0xf] %v996_v40  ;;  %v837_v47 = vmul.f32 0.5, %v825_v41  ;;  %v614_v39 = vadd.f32 %v613_v62, %v3139_v0  ;;  %v664_v24 = vadd.f32 %v663_v51, %v3064_v17 }
  0xf5   : > { %v3186_v44 = vadd.f32 %v937_v45, %v884_v27  ;;  %v3189_v46 = vadd.f32 %v1037_v36, %v984_v26  ;;  %v774_v49 = vsel %vm762_vm9, 1.0, %v2744_v14  ;;  %v786_v52 = vsel %vm762_vm9, 0.0, %v738_v37  ;;  %2719 = vmatpush.msk.msra.mxu0 %vm762_vm9, %v2745_v21  ;;  %v666_v17 = vpop.f32.mrf.mxu3 }
  0xf6   : > { %v798_v55 = vpack.c.bf16 %v774_v49, %v774_v49  ;;  %v3198_v53 = vadd.f32 %v837_v47, %v785_v34  ;;  %v826_v57 = vsub.f32 %v724_v43, %v786_v52  ;;  %v725_v25 = vmul.f32 %v2973_v63, %v614_v39  ;;  %v2551_v43 = vld [vmem:[#allocation2 + $0x78] sm:$0xff]  ;;  %v2558_v47 = vld [vmem:[#allocation2 + $0x30] sm:$0xff] }
  0xf7   : > { %vm961_vm10 = vcmp.ge.f32.partialorder %v3186_v44, 1.0  ;;  %vm1061_vm11 = vcmp.ge.f32.partialorder %v3189_v46, 1.0  ;;  %2720 = vmatpush.msk.msra.mxu0 %vm761_vm6, %v2745_v21  ;;  %v722_v54 = vmul.f32 %v2984_v16, %v664_v24  ;;  %v667_v32 = vadd.f32 %v666_v17, %v3139_v0 }
  0xf8   : > { %v973_v58 = vsel %vm961_vm10, 1.0, %v2744_v14  ;;  %v985_v60 = vsel %vm961_vm10, 0.0, %v3186_v44  ;;  %v1073_v61 = vsel %vm1061_vm11, 1.0, %v2744_v14  ;;  %814 = vst [vmem:[%s3105_s18 + $0x30] sm:$0xf] %v798_v55  ;;  %v2561_v5 = vld [vmem:[#allocation2 + $0xb8] sm:$0xff]  ;;  %1229 = vmatmul.bf16.vlgmr.msrb.gmra.mxu1 %v2550_v8 }
  0xf9   : > { %v997_v1 = vpack.c.bf16 %v973_v58, %v973_v58  ;;  %v1026_v3 = vsub.f32 %v718_v42, %v985_v60  ;;  %v1085_v59 = vpack.c.bf16 %v1073_v61, %v1073_v61  ;;  %vm861_vm12 = vcmp.ge.f32.partialorder %v3198_v53, 1.0  ;;  %1313 = vmatpush.bf16.xpose.msrb.mxu3 %v2561_v5  ;;  %2721 = vmatpush.msk.msra.mxu0 %vm760_vm1, %v2745_v21 }
  0xfa   : > { %v838_v7 = vmul.f32 0.5, %v826_v57  ;;  %v873_v10 = vsel %vm861_vm12, 1.0, %v2744_v14  ;;  %v885_v11 = vsel %vm861_vm12, 0.0, %v3198_v53  ;;  %1271 = vmatpush.bf16.xpose.msrb.mxu2 %v2556_v4  ;;  %v726_v0 = vmul.f32 %v2984_v16, %v667_v32  ;;  %v2555_v53 = vld [vmem:[#allocation2 + $0x50] sm:$0xff] }
  0xfb   : > { %v1038_v9 = vmul.f32 0.5, %v1026_v3  ;;  %1014 = vst [vmem:[%s3105_s18 + $0x18] sm:$0xf] %v997_v1  ;;  %v897_v15 = vpack.c.bf16 %v873_v10, %v873_v10  ;;  %v926_v6 = vsub.f32 %v721_v56, %v885_v11  ;;  %2722 = vmatpush.msk.msra.mxu0 %vm759_vm13, %v2745_v21 }
  0xfc   : > { %v850_v20 = vadd.f32 %v838_v7, %v786_v52  ;;  %1102 = vst [vmem:[%s3105_s18 + $0xc] sm:$0xf] %v1085_v59 }
  0xfd   : > { %v3222_v22 = vadd.f32 %v1038_v9, %v985_v60  ;;  %914 = vst [vmem:[%s3105_s18 + $0x24] sm:$0xf] %v897_v15  ;;  %v938_v23 = vmul.f32 0.5, %v926_v6 }
  0xfe   : > { %vm862_vm14 = vcmp.ge.f32.partialorder %v850_v20, 1.0 }
  0xff   : > { %vm1062_vm15 = vcmp.ge.f32.partialorder %v3222_v22, 1.0  ;;  %v874_v26 = vsel %vm862_vm14, 1.0, %v2744_v14  ;;  %v886_v48 = vsel %vm862_vm14, 0.0, %v850_v20  ;;  %v950_v28 = vadd.f32 %v938_v23, %v885_v11  ;;  %2723 = vmatpush.msk.msra.mxu1 %vm862_vm14, %v2745_v21 }
 0x100   : > { %v1074_v27 = vsel %vm1062_vm15, 1.0, %v2744_v14  ;;  %v898_v63 = vpack.c.bf16 %v874_v26, %v874_v26  ;;  %v927_v31 = vsub.f32 %v725_v25, %v886_v48  ;;  %1191 = vmatmul.bf16.gmra.mxu0 %v2547_v29 }
 0x101   : > { %v1086_v12 = vpack.c.bf16 %v1074_v27, %v1074_v27  ;;  %vm962_vm2 = vcmp.ge.f32.partialorder %v950_v28, 1.0  ;;  %1272 = vmatmul.bf16.vlgmr.msrb.gmra.mxu2 %v2554_v30  ;;  %1314 = vmatpush.bf16.xpose.msrb.mxu3 %v2560_v33 }
 0x102   : > { %v974_v13 = vsel %vm962_vm2, 1.0, %v2744_v14  ;;  %v986_v34 = vsel %vm962_vm2, 0.0, %v950_v28  ;;  %v939_v35 = vmul.f32 0.5, %v927_v31  ;;  %915 = vst [vmem:[%s3105_s18 + $0x34] sm:$0xf] %v898_v63  ;;  %2724 = vmatpush.msk.msra.mxu1 %vm861_vm12, %v2745_v21 }
 0x103   : > { %1103 = vst [vmem:[%s3105_s18 + $0x1c] sm:$0xf] %v1086_v12  ;;  %v998_v37 = vpack.c.bf16 %v974_v13, %v974_v13  ;;  %v1027_v36 = vsub.f32 %v722_v54, %v986_v34 }
 0x104   : > { %v951_v45 = vadd.f32 %v939_v35, %v886_v48  ;;  %2725 = vmatpush.msk.msra.mxu1 %vm860_vm8, %v2745_v21 }
 0x105   : > { %1015 = vst [vmem:[%s3105_s18 + $0x28] sm:$0xf] %v998_v37  ;;  %v1039_v40 = vmul.f32 0.5, %v1027_v36 }
 0x106   : > { %vm963_vm1 = vcmp.ge.f32.partialorder %v951_v45, 1.0  ;;  %2726 = vmatpush.msk.msra.mxu1 %vm859_vm3, %v2745_v21 }
 0x107   : > { %v1051_v2 = vadd.f32 %v1039_v40, %v986_v34  ;;  %v975_v41 = vsel %vm963_vm1, 1.0, %v2744_v14  ;;  %v987_v42 = vsel %vm963_vm1, 0.0, %v951_v45  ;;  %2727 = vmatpush.msk.msra.mxu2 %vm963_vm1, %v2745_v21 }
 0x108   : > { %v999_v49 = vpack.c.bf16 %v975_v41, %v975_v41  ;;  %v1028_v50 = vsub.f32 %v726_v0, %v987_v42  ;;  %1234 = vmatmul.bf16.gmra.mxu1 %v2551_v43  ;;  %1315 = vmatmul.bf16.vlgmr.msrb.gmra.mxu3 %v2558_v47 }
 0x109   : > { %vm1063_vm13 = vcmp.ge.f32.partialorder %v1051_v2, 1.0  ;;  %2728 = vmatpush.msk.msra.mxu2 %vm962_vm2, %v2745_v21 }
 0x10a   : > { %v1075_v16 = vsel %vm1063_vm13, 1.0, %v2744_v14  ;;  %v1040_v51 = vmul.f32 0.5, %v1028_v50  ;;  %1016 = vst [vmem:[%s3105_s18 + $0x38] sm:$0xf] %v999_v49 }
 0x10b   : > { %v1087_v52 = vpack.c.bf16 %v1075_v16, %v1075_v16  ;;  %2729 = vmatpush.msk.msra.mxu2 %vm961_vm10, %v2745_v21 }
 0x10c   : > { %v1052_v55 = vadd.f32 %v1040_v51, %v987_v42 }
 0x10d   : > { %1104 = vst [vmem:[%s3105_s18 + $0x2c] sm:$0xf] %v1087_v52  ;;  %2730 = vmatpush.msk.msra.mxu2 %vm960_vm7, %v2745_v21 }
 0x10e   : > { %vm1064_vm4 = vcmp.ge.f32.partialorder %v1052_v55, 1.0 }
 0x10f   : > { %v1076_v19 = vsel %vm1064_vm4, 1.0, %v2744_v14  ;;  %2731 = vmatpush.msk.msra.mxu3 %vm1064_vm4, %v2745_v21 }
 0x110   : > { %v1088_v57 = vpack.c.bf16 %v1076_v19, %v1076_v19 }
 0x111   : > { %1277 = vmatmul.bf16.gmra.mxu2 %v2555_v53  ;;  %2732 = vmatpush.msk.msra.mxu3 %vm1063_vm13, %v2745_v21 }
 0x112   : > { %1105 = vst [vmem:[%s3105_s18 + $0x3c] sm:$0xf] %v1088_v57 }
 0x113   : > { %2733 = vmatpush.msk.msra.mxu3 %vm1062_vm15, %v2745_v21 }
 0x115   : > { %2734 = vmatpush.msk.msra.mxu3 %vm1061_vm11, %v2745_v21 }
 0x118   : > { %1320 = vmatmul.bf16.gmra.mxu3 %v2559_v38 }
 0x16d   : > { %v1187_v44 = vpop.f32.mrf.mxu0 }
 0x16e   : > { %v1326_v58 = vmul.f32 0.125, %v1187_v44 }
 0x170   : > { %2461 = vmatmul.msk.f32.vlgmr.msra.gmra.mxu0 %vm420_vm0, %v1326_v58 }
 0x175   : > { %v1189_v18 = vpop.f32.mrf.mxu0  ;;  %v1230_v60 = vpop.f32.mrf.mxu1 }
 0x176   : > { %v1327_v61 = vmul.f32 0.125, %v1189_v18  ;;  %v1330_v62 = vmul.f32 0.125, %v1230_v60 }
 0x178   : > { %2462 = vmatmul.msk.f32.gmra.mxu0 %vm420_vm0, %v1327_v61  ;;  %2465 = vmatmul.msk.f32.vlgmr.msra.gmra.mxu1 %vm420_vm0, %v1330_v62 }
 0x17d   : > { %v1192_v8 = vpop.f32.mrf.mxu0  ;;  %v1232_v1 = vpop.f32.mrf.mxu1 }
 0x17e   : > { %v1328_v3 = vmul.f32 0.125, %v1192_v8  ;;  %v1331_v59 = vmul.f32 0.125, %v1232_v1 }
 0x180   : > { %2463 = vmatmul.msk.f32.gmra.mxu0 %vm420_vm0, %v1328_v3  ;;  %2466 = vmatmul.msk.f32.gmra.mxu1 %vm420_vm0, %v1331_v59 }
 0x184   : > { %v1273_v46 = vpop.f32.mrf.mxu2 }
 0x185   : > { %v1334_v4 = vmul.f32 0.125, %v1273_v46  ;;  %v1194_v5 = vpop.f32.mrf.mxu0  ;;  %v1235_v56 = vpop.f32.mrf.mxu1 }
 0x186   : > { %v1329_v7 = vmul.f32 0.125, %v1194_v5  ;;  %v1332_v9 = vmul.f32 0.125, %v1235_v56 }
 0x187   : > { %2469 = vmatmul.msk.f32.vlgmr.msra.gmra.mxu2 %vm420_vm0, %v1334_v4 }
 0x188   : > { %2464 = vmatmul.msk.f32.gmra.mxu0 %vm420_vm0, %v1329_v7  ;;  %2467 = vmatmul.msk.f32.gmra.mxu1 %vm420_vm0, %v1332_v9 }
 0x18b   : > { %v1316_v11 = vpop.f32.mrf.mxu3 }
 0x18c   : > { %v1275_v10 = vpop.f32.mrf.mxu2  ;;  %v1338_v15 = vmul.f32 0.125, %v1316_v11 }
 0x18d   : > { %v1335_v39 = vmul.f32 0.125, %v1275_v10  ;;  %v1237_v6 = vpop.f32.mrf.mxu1 }
 0x18e   : > { %v1333_v20 = vmul.f32 0.125, %v1237_v6  ;;  %2473 = vmatmul.msk.f32.vlgmr.msra.gmra.mxu3 %vm420_vm0, %v1338_v15 }
 0x18f   : > { %2470 = vmatmul.msk.f32.gmra.mxu2 %vm420_vm0, %v1335_v39 }
 0x190   : > { %2468 = vmatmul.msk.f32.gmra.mxu1 %vm420_vm0, %v1333_v20 }
 0x193   : > { %v1318_v22 = vpop.f32.mrf.mxu3 }
 0x194   : > { %v1278_v21 = vpop.f32.mrf.mxu2  ;;  %v1339_v24 = vmul.f32 0.125, %v1318_v22 }
 0x195   : > { %v1336_v23 = vmul.f32 0.125, %v1278_v21 }
 0x196   : > { %2474 = vmatmul.msk.f32.gmra.mxu3 %vm420_vm0, %v1339_v24 }
 0x197   : > { %2471 = vmatmul.msk.f32.gmra.mxu2 %vm420_vm0, %v1336_v23 }
 0x19b   : > { %v1321_v26 = vpop.f32.mrf.mxu3 }
 0x19c   : > { %v1280_v25 = vpop.f32.mrf.mxu2  ;;  %v1340_v27 = vmul.f32 0.125, %v1321_v26 }
 0x19d   : > { %v1337_v48 = vmul.f32 0.125, %v1280_v25 }
 0x19e   : > { %2475 = vmatmul.msk.f32.gmra.mxu3 %vm420_vm0, %v1340_v27 }
 0x19f   : > { %2472 = vmatmul.msk.f32.gmra.mxu2 %vm420_vm0, %v1337_v48 }
 0x1a3   : > { %v1323_v28 = vpop.f32.mrf.mxu3 }
 0x1a4   : > { %v1341_v17 = vmul.f32 0.125, %v1323_v28 }
 0x1a6   : > { %2476 = vmatmul.msk.f32.gmra.mxu3 %vm420_vm0, %v1341_v17 }
 0x1ed   : > { %v1387_v29 = vpop.f32.mrf.mxu0 }
 0x1ee   : > { %v1522_v30 = vmul.f32 0.5, %v1387_v29 }
 0x1f0   : > { %vm1530_vm3 = vcmp.ge.f32.partialorder %v1522_v30, 0.5 }
 0x1f1   : > { %v1534_v12 = vsel %vm1530_vm3, 1.0, %v2744_v14  ;;  %v1538_v54 = vsel %vm1530_vm3, 0.0, %v1522_v30 }
 0x1f2   : > { %v1542_v63 = vpack.c.bf16 %v1534_v12, %v1534_v12 }
 0x1f4   : > { %1546 = vst [vmem:[#allocation3] sm:$0xf] %v1542_v63 }
 0x1f5   : > { %v1390_v31 = vpop.f32.mrf.mxu0  ;;  %v1428_v33 = vpop.f32.mrf.mxu1 }
 0x1f6   : > { %v1523_v13 = vmul.f32 0.5, %v1390_v31  ;;  %v1550_v34 = vsub.f32 %v1428_v33, %v1538_v54 }
 0x1f8   : > { %v1554_v35 = vmul.f32 0.5, %v1550_v34  ;;  %vm1531_vm5 = vcmp.ge.f32.partialorder %v1523_v13, 0.5 }
 0x1f9   : > { %v1535_v32 = vsel %vm1531_vm5, 1.0, %v2744_v14  ;;  %v1539_v0 = vsel %vm1531_vm5, 0.0, %v1523_v13 }
 0x1fa   : > { %v1558_v37 = vadd.f32 %v1554_v35, %v1538_v54  ;;  %v1543_v36 = vpack.c.bf16 %v1535_v32, %v1535_v32  ;;  %v3329_v32 = vld [vmem:[%s3524_s5] sm:$0xff] }
 0x1fb   : > { %v2487_v12 = vld [vmem:[#allocation3] sm:$0xf] }
 0x1fc   : > { %1547 = vst [vmem:[#allocation3 + $0x10] sm:$0xf] %v1543_v36  ;;  %vm1562_vm6 = vcmp.ge.f32.partialorder %v1558_v37, 0.5 }
 0x1fd   : > { %v1393_v45 = vpop.f32.mrf.mxu0  ;;  %v1431_v40 = vpop.f32.mrf.mxu1  ;;  %v1566_v2 = vsel %vm1562_vm6, 1.0, %v2744_v14  ;;  %v1570_v18 = vsel %vm1562_vm6, 0.0, %v1558_v37 }
 0x1fe   : > { %v1524_v41 = vmul.f32 0.5, %v1393_v45  ;;  %v1551_v42 = vsub.f32 %v1431_v40, %v1539_v0  ;;  %v1574_v43 = vpack.c.bf16 %v1566_v2, %v1566_v2 }
 0x200   : > { %v1555_v47 = vmul.f32 0.5, %v1551_v42  ;;  %vm1532_vm7 = vcmp.ge.f32.partialorder %v1524_v41, 0.5  ;;  %1578 = vst [vmem:[#allocation3 + $0x4] sm:$0xf] %v1574_v43 }
 0x201   : > { %v1536_v49 = vsel %vm1532_vm7, 1.0, %v2744_v14  ;;  %v1540_v55 = vsel %vm1532_vm7, 0.0, %v1524_v41 }
 0x202   : > { %v1559_v50 = vadd.f32 %v1555_v47, %v1539_v0  ;;  %v1544_v16 = vpack.c.bf16 %v1536_v49, %v1536_v49 }
 0x203   : > { %v2564_v27 = vld [vmem:[#allocation3 + $0xc] sm:$0xf0] }
 0x204   : > { %1548 = vst [vmem:[#allocation3 + $0x20] sm:$0xf] %v1544_v16  ;;  %vm1563_vm8 = vcmp.ge.f32.partialorder %v1559_v50, 0.5  ;;  %v2488_v63 = vor.u32 %v2564_v27, %v2487_v12 }
 0x205   : > { %v1396_v51 = vpop.f32.mrf.mxu0  ;;  %v1434_v52 = vpop.f32.mrf.mxu1  ;;  %v1567_v19 = vsel %vm1563_vm8, 1.0, %v2744_v14  ;;  %v1571_v10 = vsel %vm1563_vm8, 0.0, %v1559_v50 }
 0x206   : > { %v1525_v53 = vmul.f32 0.5, %v1396_v51  ;;  %v1552_v57 = vsub.f32 %v1434_v52, %v1540_v55  ;;  %v1575_v38 = vpack.c.bf16 %v1567_v19, %v1567_v19 }
 0x208   : > { %v1556_v44 = vmul.f32 0.5, %v1552_v57  ;;  %vm1533_vm9 = vcmp.ge.f32.partialorder %v1525_v53, 0.5  ;;  %1579 = vst [vmem:[#allocation3 + $0x14] sm:$0xf] %v1575_v38 }
 0x209   : > { %v1537_v60 = vsel %vm1533_vm9, 1.0, %v2744_v14  ;;  %v1541_v59 = vsel %vm1533_vm9, 0.0, %v1525_v53 }
 0x20a   : > { %v1469_v58 = vpop.f32.mrf.mxu2  ;;  %v1560_v61 = vadd.f32 %v1556_v44, %v1540_v55  ;;  %v1545_v8 = vpack.c.bf16 %v1537_v60, %v1537_v60 }
 0x20b   : > { %v1582_v62 = vsub.f32 %v1469_v58, %v1570_v18  ;;  %v2503_v23 = vld [vmem:[#allocation3 + $0x20] sm:$0xf] }
 0x20c   : > { %1549 = vst [vmem:[#allocation3 + $0x30] sm:$0xf] %v1545_v8  ;;  %vm1564_vm10 = vcmp.ge.f32.partialorder %v1560_v61, 0.5 }
 0x20d   : > { %v1586_v1 = vmul.f32 0.5, %v1582_v62  ;;  %v1437_v3 = vpop.f32.mrf.mxu1  ;;  %v1568_v46 = vsel %vm1564_vm10, 1.0, %v2744_v14  ;;  %v1572_v54 = vsel %vm1564_vm10, 0.0, %v1560_v61 }
 0x20e   : > { %v1553_v5 = vsub.f32 %v1437_v3, %v1541_v59  ;;  %v1576_v56 = vpack.c.bf16 %v1568_v46, %v1568_v46 }
 0x20f   : > { %v1590_v4 = vadd.f32 %v1586_v1, %v1570_v18  ;;  %v2489_v53 = vld [vmem:[#allocation3 + $0x10] sm:$0xf0]  ;;  %v2562_v18 = vld [vmem:[#allocation3 + $0x4] sm:$0xf] }
 0x210   : > { %v1557_v7 = vmul.f32 0.5, %v1553_v5  ;;  %1580 = vst [vmem:[#allocation3 + $0x24] sm:$0xf] %v1576_v56  ;;  %v2492_v62 = vor.u32 %v2562_v18, %v2489_v53  ;;  %v2573_v5 = vld [vmem:[%s3524_s5 + $0x8] sm:$0xff] }
 0x211   : > { %vm1594_vm11 = vcmp.ge.f32.partialorder %v1590_v4, 0.5  ;;  %v1510_v11 = vpop.f32.mrf.mxu3 }
 0x212   : > { %v1472_v9 = vpop.f32.mrf.mxu2  ;;  %v1598_v39 = vsel %vm1594_vm11, 1.0, %v2744_v14  ;;  %v1602_v15 = vsel %vm1594_vm11, 0.0, %v1590_v4  ;;  %v1561_v6 = vadd.f32 %v1557_v7, %v1541_v59 }
 0x213   : > { %v1583_v20 = vsub.f32 %v1472_v9, %v1571_v10  ;;  %v1606_v21 = vpack.c.bf16 %v1598_v39, %v1598_v39  ;;  %v1614_v22 = vsub.f32 %v1510_v11, %v1602_v15  ;;  %v2568_v24 = vld [vmem:[#allocation3 + $0x2c] sm:$0xf0] }
 0x214   : > { %v2504_v48 = vor.u32 %v2568_v24, %v2503_v23  ;;  %vm1565_vm12 = vcmp.ge.f32.partialorder %v1561_v6, 0.5 }
 0x215   : > { %v1587_v25 = vmul.f32 0.5, %v1583_v20  ;;  %1610 = vst [vmem:[#allocation3 + $0x8] sm:$0xf] %v1606_v21  ;;  %v1618_v26 = vmul.f32 0.5, %v1614_v22  ;;  %v1569_v28 = vsel %vm1565_vm12, 1.0, %v2744_v14  ;;  %v1573_v51 = vsel %vm1565_vm12, 0.0, %v1561_v6 }
 0x216   : > { %1720 = vmatpush.bf16.msrb.mxu0 %v2504_v48  ;;  %v1577_v30 = vpack.c.bf16 %v1569_v28, %v1569_v28 }
 0x217   : > { %v1591_v17 = vadd.f32 %v1587_v25, %v1571_v10  ;;  %v1622_v29 = vadd.f32 %v1618_v26, %v1602_v15  ;;  %v2566_v43 = vld [vmem:[#allocation3 + $0x24] sm:$0xf] }
 0x218   : > { %1581 = vst [vmem:[#allocation3 + $0x34] sm:$0xf] %v1577_v30  ;;  %v2570_v25 = vld [vmem:[%s3523_s4] sm:$0xff]  ;;  %v2571_v30 = vld [vmem:[%s3523_s4 + $0x8] sm:$0xff] }
 0x219   : > { %vm1626_vm14 = vcmp.ge.f32.partialorder %v1622_v29, 0.5  ;;  %vm1595_vm15 = vcmp.ge.f32.partialorder %v1591_v17, 0.5  ;;  %v1513_v13 = vpop.f32.mrf.mxu3 }
 0x21a   : > { %v1630_v31 = vsel %vm1626_vm14, 1.0, %v2744_v14  ;;  %v1475_v33 = vpop.f32.mrf.mxu2  ;;  %v1599_v34 = vsel %vm1595_vm15, 1.0, %v2744_v14  ;;  %v1603_v35 = vsel %vm1595_vm15, 0.0, %v1591_v17  ;;  %1721 = vmatpush.bf16.msrb.mxu0 %v2488_v63 }
 0x21b   : > { %v1634_v37 = vpack.c.bf16 %v1630_v31, %v1630_v31  ;;  %v1584_v36 = vsub.f32 %v1475_v33, %v1572_v54  ;;  %v1607_v45 = vpack.c.bf16 %v1599_v34, %v1599_v34  ;;  %v1615_v40 = vsub.f32 %v1513_v13, %v1603_v35 }
 0x21c   : > { %v2495_v23 = vld [vmem:[#allocation3 + $0x8] sm:$0xf] }
 0x21d   : > { %1638 = vst [vmem:[#allocation3 + $0xc] sm:$0xf] %v1634_v37  ;;  %v1588_v0 = vmul.f32 0.5, %v1584_v36  ;;  %v1619_v2 = vmul.f32 0.5, %v1615_v40  ;;  %2517 = vmatmul.msk.bf16.vlgmr.msrb.gmra.mxu0 %vm420_vm0, %v3329_v32  ;;  %v3366_v37 = vpop.permute.xlu0 %1888 }
 0x21e   : > { %1812 = vmatpush.bf16.msra.mxu0 %v2504_v48  ;;  %1611 = vst [vmem:[#allocation3 + $0x18] sm:$0xf] %v1607_v45 }
 0x21f   : > { %v1592_v41 = vadd.f32 %v1588_v0, %v1572_v54  ;;  %v1623_v42 = vadd.f32 %v1619_v2, %v1603_v35  ;;  %v2505_v47 = vld [vmem:[#allocation3 + $0x30] sm:$0xf0] }
 0x220   : > { %v2508_v49 = vor.u32 %v2566_v43, %v2505_v47  ;;  %v3375_v47 = vpop.permute.xlu1 %1893 }
 0x221   : > { %vm1627_vm2 = vcmp.ge.f32.partialorder %v1623_v42, 0.5  ;;  %vm1596_vm1 = vcmp.ge.f32.partialorder %v1592_v41, 0.5  ;;  %v1516_v52 = vpop.f32.mrf.mxu3 }
 0x222   : > { %1813 = vmatpush.bf16.msra.mxu0 %v2488_v63  ;;  %v1631_v50 = vsel %vm1627_vm2, 1.0, %v2744_v14  ;;  %v1478_v16 = vpop.f32.mrf.mxu2  ;;  %v1600_v55 = vsel %vm1596_vm1, 1.0, %v2744_v14  ;;  %v1604_v19 = vsel %vm1596_vm1, 0.0, %v1592_v41  ;;  %1739 = vmatpush.bf16.msrb.mxu1 %v2508_v49 }
 0x223   : > { %v1635_v57 = vpack.c.bf16 %v1631_v50, %v1631_v50  ;;  %v1585_v38 = vsub.f32 %v1478_v16, %v1573_v51  ;;  %v1608_v44 = vpack.c.bf16 %v1600_v55, %v1600_v55  ;;  %v1616_v58 = vsub.f32 %v1516_v52, %v1604_v19 }
 0x224   : > { %v2563_v17 = vld [vmem:[#allocation3 + $0xc] sm:$0xf] }
 0x225   : > { %1639 = vst [vmem:[#allocation3 + $0x1c] sm:$0xf] %v1635_v57  ;;  %v1589_v60 = vmul.f32 0.5, %v1585_v38  ;;  %v1620_v61 = vmul.f32 0.5, %v1616_v58  ;;  %v2565_v22 = vld [vmem:[#allocation3 + $0x14] sm:$0xf0] }
 0x226   : > { %1612 = vst [vmem:[#allocation3 + $0x28] sm:$0xf] %v1608_v44  ;;  %1740 = vmatpush.bf16.msrb.mxu1 %v2492_v62  ;;  %v2496_v24 = vor.u32 %v2565_v22, %v2495_v23 }
 0x227   : > { %v1593_v8 = vadd.f32 %v1589_v60, %v1573_v51  ;;  %v1624_v1 = vadd.f32 %v1620_v61, %v1604_v19  ;;  %v3386_v60 = vpop.permute.xlu2 %1898 }
 0x229   : > { %vm1628_vm13 = vcmp.ge.f32.partialorder %v1624_v1, 0.5  ;;  %vm1597_vm4 = vcmp.ge.f32.partialorder %v1593_v8, 0.5  ;;  %v1519_v59 = vpop.f32.mrf.mxu3  ;;  %2519 = vmatmul.msk.bf16.vlgmr.msrb.gmra.mxu1 %vm420_vm0, %v3329_v32 }
 0x22a   : > { %1831 = vmatpush.bf16.msra.mxu1 %v2508_v49  ;;  %v1632_v3 = vsel %vm1628_vm13, 1.0, %v2744_v14  ;;  %v1601_v46 = vsel %vm1597_vm4, 1.0, %v2744_v14  ;;  %v1605_v4 = vsel %vm1597_vm4, 0.0, %v1593_v8 }
 0x22b   : > { %v1636_v56 = vpack.c.bf16 %v1632_v3, %v1632_v3  ;;  %v1609_v7 = vpack.c.bf16 %v1601_v46, %v1601_v46  ;;  %v1617_v9 = vsub.f32 %v1519_v59, %v1605_v4 }
 0x22c   : > { %v2497_v28 = vld [vmem:[#allocation3 + $0x18] sm:$0xf0] }
 0x22d   : > { %1640 = vst [vmem:[#allocation3 + $0x2c] sm:$0xf] %v1636_v56  ;;  %v1621_v10 = vmul.f32 0.5, %v1617_v9  ;;  %2518 = vmatmul.msk.bf16.gmra.mxu0 %vm420_vm0, %v2573_v5  ;;  %v2511_v6 = vld [vmem:[#allocation3 + $0x28] sm:$0xf]  ;;  %v2500_v29 = vor.u32 %v2563_v17, %v2497_v28 }
 0x22e   : > { %1832 = vmatpush.bf16.msra.mxu1 %v2492_v62  ;;  %1613 = vst [vmem:[#allocation3 + $0x38] sm:$0xf] %v1609_v7 }
 0x22f   : > { %v1625_v11 = vadd.f32 %v1621_v10, %v1605_v4 }
 0x231   : > { %vm1629_vm3 = vcmp.ge.f32.partialorder %v1625_v11, 0.5 }
 0x232   : > { %v1633_v39 = vsel %vm1629_vm3, 1.0, %v2744_v14 }
 0x233   : > { %v1637_v15 = vpack.c.bf16 %v1633_v39, %v1633_v39 }
 0x234   : > { %v2567_v26 = vld [vmem:[#allocation3 + $0x2c] sm:$0xf] }
 0x235   : > { %1641 = vst [vmem:[#allocation3 + $0x3c] sm:$0xf] %v1637_v15  ;;  %v2569_v20 = vld [vmem:[#allocation3 + $0x34] sm:$0xf0] }
 0x236   : > { %v2512_v21 = vor.u32 %v2569_v20, %v2511_v6  ;;  %v3399_v20 = vpop.permute.xlu0 %1903 }
 0x238   : > { %1758 = vmatpush.bf16.msrb.mxu2 %v2512_v21 }
 0x239   : > { %2520 = vmatmul.msk.bf16.gmra.mxu1 %vm420_vm0, %v2573_v5 }
 0x23c   : > { %1759 = vmatpush.bf16.msrb.mxu2 %v2496_v24  ;;  %v2513_v48 = vld [vmem:[#allocation3 + $0x38] sm:$0xf0] }
 0x23d   : > { %v2516_v27 = vor.u32 %v2567_v26, %v2513_v48  ;;  %2533 = vmatmul.msk.bf16.vlgmr.msra.gmra.mxu0 %vm420_vm0, %v2570_v25 }
 0x23f   : > { %2521 = vmatmul.msk.bf16.vlgmr.msrb.gmra.mxu2 %vm420_vm0, %v3329_v32  ;;  %1777 = vmatpush.bf16.msrb.mxu3 %v2516_v27 }
 0x240   : > { %1850 = vmatpush.bf16.msra.mxu2 %v2512_v21 }
 0x243   : > { %1778 = vmatpush.bf16.msrb.mxu3 %v2500_v29 }
 0x244   : > { %1851 = vmatpush.bf16.msra.mxu2 %v2496_v24 }
 0x246   : > { %2523 = vmatmul.msk.bf16.vlgmr.msrb.gmra.mxu3 %vm420_vm0, %v3329_v32 }
 0x247   : > { %1869 = vmatpush.bf16.msra.mxu3 %v2516_v27 }
 0x249   : > { %2535 = vmatmul.msk.bf16.vlgmr.msra.gmra.mxu1 %vm420_vm0, %v2570_v25 }
 0x24b   : > { %1870 = vmatpush.bf16.msra.mxu3 %v2500_v29 }
 0x24d   : > { %2534 = vmatmul.msk.bf16.gmra.mxu0 %vm420_vm0, %v2571_v30 }
 0x24f   : > { %2522 = vmatmul.msk.bf16.gmra.mxu2 %vm420_vm0, %v2573_v5 }
 0x256   : > { %2524 = vmatmul.msk.bf16.gmra.mxu3 %vm420_vm0, %v2573_v5 }
 0x259   : > { %2536 = vmatmul.msk.bf16.gmra.mxu1 %vm420_vm0, %v2571_v30 }
 0x25f   : > { %2537 = vmatmul.msk.bf16.vlgmr.msra.gmra.mxu2 %vm420_vm0, %v2570_v25 }
 0x266   : > { %2539 = vmatmul.msk.bf16.vlgmr.msra.gmra.mxu3 %vm420_vm0, %v2570_v25 }
 0x26f   : > { %2538 = vmatmul.msk.bf16.gmra.mxu2 %vm420_vm0, %v2571_v30 }
 0x276   : > { %2540 = vmatmul.msk.bf16.gmra.mxu3 %vm420_vm0, %v2571_v30 }
 0x29a   : > { %v1723_v12 = vpop.f32.mrf.mxu0 }
 0x2a2   : > { %v1725_v63 = vpop.f32.mrf.mxu0 }
 0x2a6   : > { %v1742_v31 = vpop.f32.mrf.mxu1 }
 0x2aa   : > { %v1728_v33 = vpop.f32.mrf.mxu0 }
 0x2ae   : > { %v1744_v54 = vpop.f32.mrf.mxu1 }
 0x2b2   : > { %v1730_v13 = vpop.f32.mrf.mxu0 }
 0x2b6   : > { %v1747_v34 = vpop.f32.mrf.mxu1 }
 0x2ba   : > { %v1815_v35 = vpop.f32.mrf.mxu0 }
 0x2bb   : > { %v1816_v32 = vadd.f32 %v1815_v35, %v1723_v12 }
 0x2bd   : > { %v1906_v36 = vadd.f32 %v3366_v37, %v1816_v32 }
 0x2be   : > { %v3369_v45 = vpop.f32.mrf.mxu1 }
 0x2bf   : > { %v1922_v40 = vmul.f32 0.5, %v1906_v36 }
 0x2c1   : > { %vm1930_vm5 = vcmp.ge.f32.partialorder %v1922_v40, 1.0 }
 0x2c2   : > { %v3371_v0 = vpop.f32.mrf.mxu2  ;;  %v1934_v2 = vsel %vm1930_vm5, 1.0, %v2744_v14  ;;  %v1817_v41 = vpop.f32.mrf.mxu0  ;;  %v1938_v53 = vsel %vm1930_vm5, 0.0, %v1922_v40 }
 0x2c3   : > { %v1942_v42 = vpack.c.bf16 %v1934_v2, %v1934_v2  ;;  %v1818_v43 = vadd.f32 %v1817_v41, %v1725_v63 }
 0x2c5   : > { %1946 = vst [vmem:[#allocation3] sm:$0xf] %v1942_v42  ;;  %v1910_v49 = vadd.f32 %v3375_v47, %v1818_v43 }
 0x2c6   : > { %v1834_v50 = vpop.f32.mrf.mxu1 }
 0x2c7   : > { %v1923_v16 = vmul.f32 0.5, %v1910_v49  ;;  %v1835_v51 = vadd.f32 %v1834_v50, %v1742_v31 }
 0x2c9   : > { %v3378_v52 = vpop.f32.mrf.mxu3  ;;  %vm1931_vm0 = vcmp.ge.f32.partialorder %v1923_v16, 1.0  ;;  %v1907_v55 = vadd.f32 %v3366_v37, %v1835_v51 }
 0x2ca   : > { %v3381_v19 = vpop.f32.mrf.mxu2  ;;  %v1935_v57 = vsel %vm1931_vm0, 1.0, %v2744_v14  ;;  %v1820_v38 = vpop.f32.mrf.mxu0  ;;  %v1939_v56 = vsel %vm1931_vm0, 0.0, %v1923_v16 }
 0x2cb   : > { %v1943_v44 = vpack.c.bf16 %v1935_v57, %v1935_v57  ;;  %v1950_v58 = vsub.f32 %v1907_v55, %v1938_v53  ;;  %v1821_v18 = vadd.f32 %v1820_v38, %v1728_v33 }
 0x2cd   : > { %1947 = vst [vmem:[#allocation3 + $0x10] sm:$0xf] %v1943_v44  ;;  %v1954_v61 = vmul.f32 0.5, %v1950_v58  ;;  %v1914_v62 = vadd.f32 %v3386_v60, %v1821_v18 }
 0x2ce   : > { %v1836_v8 = vpop.f32.mrf.mxu1 }
 0x2cf   : > { %v1958_v1 = vadd.f32 %v1954_v61, %v1938_v53  ;;  %v1924_v3 = vmul.f32 0.5, %v1914_v62  ;;  %v1837_v59 = vadd.f32 %v1836_v8, %v1744_v54 }
 0x2d1   : > { %v3389_v46 = vpop.f32.mrf.mxu3  ;;  %vm1932_vm6 = vcmp.ge.f32.partialorder %v1924_v3, 1.0  ;;  %v1911_v4 = vadd.f32 %v3375_v47, %v1837_v59  ;;  %vm1962_vm7 = vcmp.ge.f32.partialorder %v1958_v1, 1.0 }
 0x2d2   : > { %v3392_v5 = vpop.f32.mrf.mxu2  ;;  %v1936_v7 = vsel %vm1932_vm6, 1.0, %v2744_v14  ;;  %v1822_v9 = vpop.f32.mrf.mxu0  ;;  %v1966_v10 = vsel %vm1962_vm7, 1.0, %v2744_v14  ;;  %v1940_v17 = vsel %vm1932_vm6, 0.0, %v1924_v3 }
 0x2d3   : > { %v1944_v11 = vpack.c.bf16 %v1936_v7, %v1936_v7  ;;  %v1951_v39 = vsub.f32 %v1911_v4, %v1939_v56  ;;  %v1823_v15 = vadd.f32 %v1822_v9, %v1730_v13  ;;  %v1974_v6 = vpack.c.bf16 %v1966_v10, %v1966_v10 }
 0x2d5   : > { %1948 = vst [vmem:[#allocation3 + $0x20] sm:$0xf] %v1944_v11  ;;  %v1955_v21 = vmul.f32 0.5, %v1951_v39  ;;  %v1918_v22 = vadd.f32 %v3399_v20, %v1823_v15 }
 0x2d6   : > { %v1839_v23 = vpop.f32.mrf.mxu1  ;;  %1978 = vst [vmem:[#allocation3 + $0x4] sm:$0xf] %v1974_v6 }
 0x2d7   : > { %v1959_v24 = vadd.f32 %v1955_v21, %v1939_v56  ;;  %v1925_v25 = vmul.f32 0.5, %v1918_v22  ;;  %v1840_v26 = vadd.f32 %v1839_v23, %v1747_v34 }
 0x2d9   : > { %v3402_v48 = vpop.f32.mrf.mxu3  ;;  %vm1933_vm8 = vcmp.ge.f32.partialorder %v1925_v25, 1.0  ;;  %v1915_v27 = vadd.f32 %v3386_v60, %v1840_v26  ;;  %vm1963_vm9 = vcmp.ge.f32.partialorder %v1959_v24, 1.0 }
 0x2da   : > { %v3405_v28 = vpop.f32.mrf.mxu2  ;;  %v1937_v29 = vsel %vm1933_vm8, 1.0, %v2744_v14  ;;  %v1967_v30 = vsel %vm1963_vm9, 1.0, %v2744_v14  ;;  %v1941_v40 = vsel %vm1933_vm8, 0.0, %v1925_v25  ;;  %v1971_v8 = vsel %vm1963_vm9, 0.0, %v1959_v24 }
 0x2db   : > { %v1945_v12 = vpack.c.bf16 %v1937_v29, %v1937_v29  ;;  %v1952_v63 = vsub.f32 %v1915_v27, %v1940_v17  ;;  %v1975_v31 = vpack.c.bf16 %v1967_v30, %v1967_v30 }
 0x2dd   : > { %1949 = vst [vmem:[#allocation3 + $0x30] sm:$0xf] %v1945_v12  ;;  %v1956_v33 = vmul.f32 0.5, %v1952_v63  ;;  %v2046_v7 = vld [vmem:[#allocation3] sm:$0xff]  }
 0x2de   : > { %v1841_v54 = vpop.f32.mrf.mxu1  ;;  %1979 = vst [vmem:[#allocation3 + $0x14] sm:$0xf] %v1975_v31  ;;  %v2050_v6 = vunpack.c.l.bf16 %v2046_v7 }
 0x2df   : > { %v1960_v13 = vadd.f32 %v1956_v33, %v1940_v17  ;;  %v1842_v34 = vadd.f32 %v1841_v54, %v3369_v45  ;;  %v1970_v45 = vsel %vm1962_vm7, 0.0, %v1958_v1 }
 0x2e1   : > { %v3413_v35 = vpop.f32.mrf.mxu3  ;;  %v1919_v32 = vadd.f32 %v3399_v20, %v1842_v34  ;;  %vm1964_vm10 = vcmp.ge.f32.partialorder %v1960_v13, 1.0 }
 0x2e2   : > { %v1853_v36 = vpop.f32.mrf.mxu2  ;;  %v1968_v41 = vsel %vm1964_vm10, 1.0, %v2744_v14  ;;  %v1972_v23 = vsel %vm1964_vm10, 0.0, %v1960_v13 }
 0x2e3   : > { %v1854_v2 = vadd.f32 %v1853_v36, %v3371_v0  ;;  %v1953_v42 = vsub.f32 %v1919_v32, %v1941_v40  ;;  %v1976_v43 = vpack.c.bf16 %v1968_v41, %v1968_v41 }
 0x2e5   : > { %v1908_v49 = vadd.f32 %v3366_v37, %v1854_v2  ;;  %v1957_v50 = vmul.f32 0.5, %v1953_v42  ;;  %1980 = vst [vmem:[#allocation3 + $0x24] sm:$0xf] %v1976_v43  ;;  %v3437_v63 = vld [vmem:[#allocation3 + $0x10] sm:$0xff]   ;;  %v2102_v2 = vunpack.c.h.bf16 %v2046_v7 }
 0x2e6   : > { %v2051_v42 = vunpack.c.l.bf16 %v3437_v63 }
 0x2e7   : > { %v1982_v16 = vsub.f32 %v1908_v49, %v1970_v45  ;;  %v1961_v51 = vadd.f32 %v1957_v50, %v1941_v40  ;;  %v2082_v40 = vld [vmem:[%s2813_s14] sm:$0xff] }
 0x2e9   : > { %v1986_v55 = vmul.f32 0.5, %v1982_v16  ;;  %v1872_v53 = vpop.f32.mrf.mxu3  ;;  %vm1965_vm11 = vcmp.ge.f32.partialorder %v1961_v51, 1.0 }
 0x2ea   : > { %v1855_v57 = vpop.f32.mrf.mxu2  ;;  %v1873_v38 = vadd.f32 %v1872_v53, %v3378_v52  ;;  %v1969_v58 = vsel %vm1965_vm11, 1.0, %v2744_v14  ;;  %v1973_v43 = vsel %vm1965_vm11, 0.0, %v1961_v51 }
 0x2eb   : > { %v1990_v0 = vadd.f32 %v1986_v55, %v1970_v45  ;;  %v1856_v44 = vadd.f32 %v1855_v57, %v3381_v19  ;;  %v1977_v61 = vpack.c.bf16 %v1969_v58, %v1969_v58 }
 0x2ec   : > { %v1909_v18 = vadd.f32 %v3366_v37, %v1873_v38 }
 0x2ed   : > { %v1912_v62 = vadd.f32 %v3375_v47, %v1856_v44  ;;  %vm1994_vm12 = vcmp.ge.f32.partialorder %v1990_v0, 1.0  ;;  %1981 = vst [vmem:[#allocation3 + $0x34] sm:$0xf] %v1977_v61 }
 0x2ee   : > { %v1998_v1 = vsel %vm1994_vm12, 1.0, %v2744_v14  ;;  %v2002_v3 = vsel %vm1994_vm12, 0.0, %v1990_v0 }
 0x2ef   : > { %v1983_v52 = vsub.f32 %v1912_v62, %v1971_v8  ;;  %v2006_v59 = vpack.c.bf16 %v1998_v1, %v1998_v1  ;;  %v2014_v4 = vsub.f32 %v1909_v18, %v2002_v3 }
 0x2f1   : > { %v1987_v56 = vmul.f32 0.5, %v1983_v52  ;;  %2010 = vst [vmem:[#allocation3 + $0x8] sm:$0xf] %v2006_v59  ;;  %v2018_v19 = vmul.f32 0.5, %v2014_v4  ;;  %v1874_v9 = vpop.f32.mrf.mxu3  ;;  %v2134_v4 = vld [vmem:[%s2813_s14 + $0x8] sm:$0xff] }
 0x2f2   : > { %v1858_v10 = vpop.f32.mrf.mxu2  ;;  %v1875_v37 = vadd.f32 %v1874_v9, %v3389_v46 }
 0x2f3   : > { %v1991_v11 = vadd.f32 %v1987_v56, %v1971_v8  ;;  %v2022_v39 = vadd.f32 %v2018_v19, %v2002_v3  ;;  %v1859_v15 = vadd.f32 %v1858_v10, %v3392_v5  ;;  %v3457_v3 = vld [vmem:[#allocation3 + $0x20] sm:$0xff]   ;;  %v2103_v19 = vunpack.c.h.bf16 %v3437_v63 }
 0x2f4   : > { %v1913_v21 = vadd.f32 %v3375_v47, %v1875_v37  ;;  %v2083_v37 = vld [vmem:[%s2813_s14 + $0x20] sm:$0xff] }
 0x2f5   : > { %vm2026_vm14 = vcmp.ge.f32.partialorder %v2022_v39, 1.0  ;;  %v1916_v22 = vadd.f32 %v3386_v60, %v1859_v15  ;;  %vm1995_vm15 = vcmp.ge.f32.partialorder %v1991_v11, 1.0 }
 0x2f6   : > { %v2030_v24 = vsel %vm2026_vm14, 1.0, %v2744_v14  ;;  %v2034_v25 = vsel %vm2026_vm14, 0.0, %v2022_v39  ;;  %v1999_v26 = vsel %vm1995_vm15, 1.0, %v2744_v14  ;;  %v2003_v27 = vsel %vm1995_vm15, 0.0, %v1991_v11 }
 0x2f7   : > { %v2038_v46 = vpack.c.bf16 %v2030_v24, %v2030_v24  ;;  %v2054_v17 = vsub.f32 %v2050_v6, %v2034_v25  ;;  %v1984_v29 = vsub.f32 %v1916_v22, %v1972_v23  ;;  %v2007_v5 = vpack.c.bf16 %v1999_v26, %v1999_v26 }
 0x2f8   : > { %v2015_v30 = vsub.f32 %v1913_v21, %v2003_v27  ;;  %v2052_v11 = vunpack.c.l.bf16 %v3457_v3 }
 0x2f9   : > { %2042 = vst [vmem:[#allocation3 + $0xc] sm:$0xf] %v2038_v46  ;;  %v2058_v47 = vmul.f32 0.5, %v2054_v17  ;;  %v1988_v12 = vmul.f32 0.5, %v1984_v29  ;;  %v1877_v31 = vpop.f32.mrf.mxu3 }
 0x2fa   : > { %2011 = vst [vmem:[#allocation3 + $0x18] sm:$0xf] %v2007_v5  ;;  %v2019_v33 = vmul.f32 0.5, %v2015_v30  ;;  %v1860_v54 = vpop.f32.mrf.mxu2  ;;  %v1878_v13 = vadd.f32 %v1877_v31, %v3402_v48 }
 0x2fb   : > { %v2062_v34 = vadd.f32 %v2058_v47, %v2034_v25  ;;  %v1992_v32 = vadd.f32 %v1988_v12, %v1972_v23  ;;  %v1861_v36 = vadd.f32 %v1860_v54, %v3405_v28 }
 0x2fc   : > { %v2023_v41 = vadd.f32 %v2019_v33, %v2003_v27  ;;  %v1917_v50 = vadd.f32 %v3386_v60, %v1878_v13  ;;  %v2186_v33 = vld [vmem:[%s2813_s14 + $0x10] sm:$0xff] }
 0x2fd   : > { %vm2066_vm2 = vcmp.ge.f32.partialorder %v2062_v34, 1.0  ;;  %v1920_v49 = vadd.f32 %v3399_v20, %v1861_v36  ;;  %vm1996_vm1 = vcmp.ge.f32.partialorder %v1992_v32, 1.0 }
 0x2fe   : > { %v2070_v48 = vsel %vm2066_vm2, 1.0, %v2744_v14  ;;  %v2074_v28 = vsel %vm2066_vm2, 0.0, %v2062_v34  ;;  %vm2027_vm13 = vcmp.ge.f32.partialorder %v2023_v41, 1.0  ;;  %v2000_v45 = vsel %vm1996_vm1, 1.0, %v2744_v14 }
 0x2ff   : > { %v2090_v16 = vadd.f32 %v2082_v40, %v2070_v48  ;;  %v2106_v51 = vsub.f32 %v2102_v2, %v2074_v28  ;;  %v2031_v55 = vsel %vm2027_vm13, 1.0, %v2744_v14  ;;  %v2035_v53 = vsel %vm2027_vm13, 0.0, %v2023_v41 }
 0x300   : > { %v2039_v60 = vpack.c.bf16 %v2031_v55, %v2031_v55  ;;  %v2055_v57 = vsub.f32 %v2051_v42, %v2035_v53  ;;  %v1985_v38 = vsub.f32 %v1920_v49, %v1973_v43  ;;  %v2004_v0 = vsel %vm1996_vm1, 0.0, %v1992_v32  ;;  %v2150_v61 = vld [vmem:[#allocation3 + $0x8] sm:$0xff]  }
 0x301   : > { %2094 = vst [vmem:[%s3451_s9] sm:$0xff] %v2090_v16  ;;  %v2110_v44 = vmul.f32 0.5, %v2106_v51  ;;  %v2008_v58 = vpack.c.bf16 %v2000_v45, %v2000_v45  ;;  %v1879_v18 = vpop.f32.mrf.mxu3  ;;  %v2016_v1 = vsub.f32 %v1917_v50, %v2004_v0  ;;  %v2154_v10 = vunpack.c.l.bf16 %v2150_v61  ;;  %v2135_v32 = vld [vmem:[%s2813_s14 + $0x28] sm:$0xff] }
 0x302   : > { %2043 = vst [vmem:[#allocation3 + $0x1c] sm:$0xf] %v2039_v60  ;;  %v2059_v62 = vmul.f32 0.5, %v2055_v57  ;;  %v1989_v8 = vmul.f32 0.5, %v1985_v38  ;;  %v1880_v52 = vadd.f32 %v1879_v18, %v3413_v35  ;;  %v2206_v34 = vunpack.c.h.bf16 %v2150_v61  ;;  %v2049_v60 = vld [vmem:[#allocation3 + $0x30] sm:$0xff]   ;;  %v2234_v61 = vld [vmem:[%s2813_s14 + $0x18] sm:$0xff] }
 0x303   : > { %v2114_v59 = vadd.f32 %v2110_v44, %v2074_v28  ;;  %2012 = vst [vmem:[#allocation3 + $0x28] sm:$0xf] %v2008_v58  ;;  %v2020_v9 = vmul.f32 0.5, %v2016_v1  ;;  %v2104_v38 = vunpack.c.h.bf16 %v3457_v3 }
 0x304   : > { %v2063_v56 = vadd.f32 %v2059_v62, %v2035_v53  ;;  %v1993_v7 = vadd.f32 %v1989_v8, %v1973_v43  ;;  %v1921_v39 = vadd.f32 %v3399_v20, %v1880_v52  ;;  %v2084_v53 = vld [vmem:[%s2813_s14 + $0x40] sm:$0xff]  ;;  %v2053_v52 = vunpack.c.l.bf16 %v2049_v60 }
 0x305   : > { %vm2118_vm4 = vcmp.ge.f32.partialorder %v2114_v59, 1.0  ;;  %v2024_v35 = vadd.f32 %v2020_v9, %v2004_v0 }
 0x306   : > { %v2122_v15 = vsel %vm2118_vm4, 1.0, %v2744_v14  ;;  %v2126_v6 = vsel %vm2118_vm4, 0.0, %v2114_v59  ;;  %vm2067_vm3 = vcmp.ge.f32.partialorder %v2063_v56, 1.0  ;;  %vm1997_vm0 = vcmp.ge.f32.partialorder %v1993_v7, 1.0  ;;  %v2187_v59 = vld [vmem:[%s2813_s14 + $0x30] sm:$0xff] }
 0x307   : > { %v2142_v21 = vadd.f32 %v2134_v4, %v2122_v15  ;;  %v2158_v22 = vsub.f32 %v2154_v10, %v2126_v6  ;;  %v2071_v23 = vsel %vm2067_vm3, 1.0, %v2744_v14  ;;  %v2075_v24 = vsel %vm2067_vm3, 0.0, %v2063_v56 }
 0x308   : > { %v2091_v25 = vadd.f32 %v2083_v37, %v2071_v23  ;;  %v2107_v26 = vsub.f32 %v2103_v19, %v2075_v24  ;;  %vm2028_vm5 = vcmp.ge.f32.partialorder %v2024_v35, 1.0  ;;  %v2001_v17 = vsel %vm1997_vm0, 1.0, %v2744_v14 }
 0x309   : > { %2146 = vst [vmem:[%s3451_s9 + $0x8] sm:$0xff] %v2142_v21  ;;  %v2162_v27 = vmul.f32 0.5, %v2158_v22  ;;  %v2032_v20 = vsel %vm2028_vm5, 1.0, %v2744_v14  ;;  %v2036_v46 = vsel %vm2028_vm5, 0.0, %v2024_v35  ;;  %v3471_v5 = vld [vmem:[#allocation3 + $0x18] sm:$0xff]   ;;  %v2005_v63 = vsel %vm1997_vm0, 0.0, %v1993_v7 }
 0x30a   : > { %2095 = vst [vmem:[%s3451_s9 + $0x20] sm:$0xff] %v2091_v25  ;;  %v2111_v29 = vmul.f32 0.5, %v2107_v26  ;;  %v2040_v30 = vpack.c.bf16 %v2032_v20, %v2032_v20  ;;  %v2056_v12 = vsub.f32 %v2052_v11, %v2036_v46  ;;  %v2009_v31 = vpack.c.bf16 %v2001_v17, %v2001_v17  ;;  %v2136_v22 = vld [vmem:[%s2813_s14 + $0x48] sm:$0xff]  ;;  %v2085_v20 = vld [vmem:[%s2813_s14 + $0x60] sm:$0xff] }
 0x30b   : > { %v2166_v47 = vadd.f32 %v2162_v27, %v2126_v6  ;;  %v2017_v13 = vsub.f32 %v1921_v39, %v2005_v63  ;;  %v2155_v36 = vunpack.c.l.bf16 %v3471_v5  ;;  %v2207_v4 = vunpack.c.h.bf16 %v3471_v5 }
 0x30c   : > { %v2115_v54 = vadd.f32 %v2111_v29, %v2075_v24  ;;  %2044 = vst [vmem:[#allocation3 + $0x2c] sm:$0xf] %v2040_v30  ;;  %v2060_v40 = vmul.f32 0.5, %v2056_v12  ;;  %v2235_v30 = vld [vmem:[%s2813_s14 + $0x38] sm:$0xff] }
 0x30d   : > { %vm2170_vm6 = vcmp.ge.f32.partialorder %v2166_v47, 1.0  ;;  %2013 = vst [vmem:[#allocation3 + $0x38] sm:$0xf] %v2009_v31  ;;  %v2021_v42 = vmul.f32 0.5, %v2017_v13 }
 0x30e   : > { %v2174_v2 = vsel %vm2170_vm6, 1.0, %v2744_v14  ;;  %v2178_v41 = vsel %vm2170_vm6, 0.0, %v2166_v47  ;;  %vm2119_vm7 = vcmp.ge.f32.partialorder %v2115_v54, 1.0  ;;  %v2064_v16 = vadd.f32 %v2060_v40, %v2036_v46 }
 0x30f   : > { %v2194_v43 = vadd.f32 %v2186_v33, %v2174_v2  ;;  %v2210_v49 = vsub.f32 %v2206_v34, %v2178_v41  ;;  %v2123_v50 = vsel %vm2119_vm7, 1.0, %v2744_v14  ;;  %v2127_v48 = vsel %vm2119_vm7, 0.0, %v2115_v54 }
 0x310   : > { %v2143_v28 = vadd.f32 %v2135_v32, %v2123_v50  ;;  %v2159_v45 = vsub.f32 %v2155_v36, %v2127_v48  ;;  %v2025_v51 = vadd.f32 %v2021_v42, %v2005_v63  ;;  %vm2068_vm8 = vcmp.ge.f32.partialorder %v2064_v16, 1.0  ;;  %v2188_v36 = vld [vmem:[%s2813_s14 + $0x50] sm:$0xff] }
 0x311   : > { %2198 = vst [vmem:[%s3451_s9 + $0x10] sm:$0xff] %v2194_v43  ;;  %v2214_v55 = vmul.f32 0.5, %v2210_v49  ;;  %v2072_v44 = vsel %vm2068_vm8, 1.0, %v2744_v14  ;;  %v2076_v58 = vsel %vm2068_vm8, 0.0, %v2064_v16  ;;  %v2105_v46 = vunpack.c.h.bf16 %v2049_v60  ;;  %v2137_v49 = vld [vmem:[%s2813_s14 + $0x68] sm:$0xff] }
 0x312   : > { %2147 = vst [vmem:[%s3451_s9 + $0x28] sm:$0xff] %v2143_v28  ;;  %v2163_v57 = vmul.f32 0.5, %v2159_v45  ;;  %vm2029_vm9 = vcmp.ge.f32.partialorder %v2025_v51, 1.0  ;;  %v2092_v8 = vadd.f32 %v2084_v53, %v2072_v44  ;;  %v2108_v1 = vsub.f32 %v2104_v38, %v2076_v58  ;;  %v2236_v38 = vld [vmem:[%s2813_s14 + $0x58] sm:$0xff] }
 0x313   : > { %v2218_v0 = vadd.f32 %v2214_v55, %v2178_v41  ;;  %v2033_v18 = vsel %vm2029_vm9, 1.0, %v2744_v14  ;;  %v2037_v56 = vsel %vm2029_vm9, 0.0, %v2025_v51  ;;  %v2152_v39 = vld [vmem:[#allocation3 + $0x28] sm:$0xff]  }
 0x314   : > { %v2167_v62 = vadd.f32 %v2163_v57, %v2127_v48  ;;  %v2041_v3 = vpack.c.bf16 %v2033_v18, %v2033_v18  ;;  %2096 = vst [vmem:[%s3451_s9 + $0x40] sm:$0xff] %v2092_v8  ;;  %v2112_v7 = vmul.f32 0.5, %v2108_v1  ;;  %v2057_v9 = vsub.f32 %v2053_v52, %v2037_v56 }
 0x315   : > { %vm2222_vm10 = vcmp.ge.f32.partialorder %v2218_v0, 1.0  ;;  %v2156_v24 = vunpack.c.l.bf16 %v2152_v39  ;;  %v2208_v2 = vunpack.c.h.bf16 %v2152_v39 }
 0x316   : > { %v2226_v19 = vsel %vm2222_vm10, 1.0, %v2744_v14  ;;  %vm2171_vm11 = vcmp.ge.f32.partialorder %v2167_v62, 1.0  ;;  %2045 = vst [vmem:[#allocation3 + $0x3c] sm:$0xf] %v2041_v3  ;;  %v2116_v35 = vadd.f32 %v2112_v7, %v2076_v58  ;;  %v2061_v21 = vmul.f32 0.5, %v2057_v9  ;;  %v2189_v58 = vld [vmem:[%s2813_s14 + $0x70] sm:$0xff] }
 0x317   : > { %v2242_v10 = vadd.f32 %v2234_v61, %v2226_v19  ;;  %v2175_v37 = vsel %vm2171_vm11, 1.0, %v2744_v14  ;;  %v2179_v11 = vsel %vm2171_vm11, 0.0, %v2167_v62 }
 0x318   : > { %v2195_v15 = vadd.f32 %v2187_v59, %v2175_v37  ;;  %v2211_v6 = vsub.f32 %v2207_v4, %v2179_v11  ;;  %vm2120_vm12 = vcmp.ge.f32.partialorder %v2116_v35, 1.0  ;;  %v2065_v25 = vadd.f32 %v2061_v21, %v2037_v56  ;;  %v2237_v56 = vld [vmem:[%s2813_s14 + $0x78] sm:$0xff] }
 0x319   : > { %2246 = vst [vmem:[%s3451_s9 + $0x18] sm:$0xff] %v2242_v10  ;;  %v2124_v26 = vsel %vm2120_vm12, 1.0, %v2744_v14  ;;  %v2128_v27 = vsel %vm2120_vm12, 0.0, %v2116_v35 }
 0x31a   : > { %2199 = vst [vmem:[%s3451_s9 + $0x30] sm:$0xff] %v2195_v15  ;;  %v2215_v23 = vmul.f32 0.5, %v2211_v6  ;;  %v2144_v29 = vadd.f32 %v2136_v22, %v2124_v26  ;;  %v2160_v5 = vsub.f32 %v2156_v24, %v2128_v27  ;;  %vm2069_vm14 = vcmp.ge.f32.partialorder %v2065_v25, 1.0 }
 0x31b   : > { %v2073_v47 = vsel %vm2069_vm14, 1.0, %v2744_v14  ;;  %v2077_v12 = vsel %vm2069_vm14, 0.0, %v2065_v25 }
 0x31c   : > { %v2219_v17 = vadd.f32 %v2215_v23, %v2179_v11  ;;  %2148 = vst [vmem:[%s3451_s9 + $0x48] sm:$0xff] %v2144_v29  ;;  %v2164_v63 = vmul.f32 0.5, %v2160_v5  ;;  %v2093_v31 = vadd.f32 %v2085_v20, %v2073_v47  ;;  %v2109_v33 = vsub.f32 %v2105_v46, %v2077_v12 }
 0x31d   : > { %v2153_v40 = vld [vmem:[#allocation3 + $0x38] sm:$0xff]  }
 0x31e   : > { %vm2223_vm15 = vcmp.ge.f32.partialorder %v2219_v17, 1.0  ;;  %v2168_v34 = vadd.f32 %v2164_v63, %v2128_v27  ;;  %2097 = vst [vmem:[%s3451_s9 + $0x60] sm:$0xff] %v2093_v31  ;;  %v2113_v32 = vmul.f32 0.5, %v2109_v33  ;;  %v2157_v28 = vunpack.c.l.bf16 %v2153_v40 }
 0x31f   : > { %v2227_v54 = vsel %vm2223_vm15, 1.0, %v2744_v14  ;;  %v2209_v61 = vunpack.c.h.bf16 %v2153_v40 }
 0x320   : > { %v2243_v13 = vadd.f32 %v2235_v30, %v2227_v54  ;;  %vm2172_vm2 = vcmp.ge.f32.partialorder %v2168_v34, 1.0  ;;  %v2117_v41 = vadd.f32 %v2113_v32, %v2077_v12 }
 0x321   : > { %v2176_v42 = vsel %vm2172_vm2, 1.0, %v2744_v14  ;;  %v2180_v43 = vsel %vm2172_vm2, 0.0, %v2168_v34 }
 0x322   : > { %2247 = vst [vmem:[%s3451_s9 + $0x38] sm:$0xff] %v2243_v13  ;;  %v2196_v50 = vadd.f32 %v2188_v36, %v2176_v42  ;;  %v2212_v48 = vsub.f32 %v2208_v2, %v2180_v43  ;;  %vm2121_vm1 = vcmp.ge.f32.partialorder %v2117_v41, 1.0 }
 0x323   : > { %v2125_v45 = vsel %vm2121_vm1, 1.0, %v2744_v14  ;;  %v2129_v16 = vsel %vm2121_vm1, 0.0, %v2117_v41 }
 0x324   : > { %2200 = vst [vmem:[%s3451_s9 + $0x50] sm:$0xff] %v2196_v50  ;;  %v2216_v51 = vmul.f32 0.5, %v2212_v48  ;;  %v2145_v55 = vadd.f32 %v2137_v49, %v2125_v45  ;;  %v2161_v53 = vsub.f32 %v2157_v28, %v2129_v16 }
 0x326   : > { %v2220_v60 = vadd.f32 %v2216_v51, %v2180_v43  ;;  %2149 = vst [vmem:[%s3451_s9 + $0x68] sm:$0xff] %v2145_v55  ;;  %v2165_v57 = vmul.f32 0.5, %v2161_v53 }
 0x328   : > { %vm2224_vm13 = vcmp.ge.f32.partialorder %v2220_v60, 1.0  ;;  %v2169_v0 = vadd.f32 %v2165_v57, %v2129_v16 }
 0x329   : > { %v2228_v44 = vsel %vm2224_vm13, 1.0, %v2744_v14 }
 0x32a   : > { %v2244_v18 = vadd.f32 %v2236_v38, %v2228_v44  ;;  %vm2173_vm4 = vcmp.ge.f32.partialorder %v2169_v0, 1.0 }
 0x32b   : > { %v2177_v62 = vsel %vm2173_vm4, 1.0, %v2744_v14  ;;  %v2181_v8 = vsel %vm2173_vm4, 0.0, %v2169_v0 }
 0x32c   : > { %2248 = vst [vmem:[%s3451_s9 + $0x58] sm:$0xff] %v2244_v18  ;;  %v2197_v1 = vadd.f32 %v2189_v58, %v2177_v62  ;;  %v2213_v52 = vsub.f32 %v2209_v61, %v2181_v8 }
 0x32e   : > { %2201 = vst [vmem:[%s3451_s9 + $0x70] sm:$0xff] %v2197_v1  ;;  %v2217_v59 = vmul.f32 0.5, %v2213_v52 }
 0x330   : > { %v2221_v4 = vadd.f32 %v2217_v59, %v2181_v8 }
 0x332   : > { %vm2225_vm3 = vcmp.ge.f32.partialorder %v2221_v4, 1.0 }
 0x333   : > { %v2229_v3 = vsel %vm2225_vm3, 1.0, %v2744_v14 }
 0x334   : > { %v2245_v19 = vadd.f32 %v2237_v56, %v2229_v3 }
 0x336   : > { %2249 = vst [vmem:[%s3451_s9 + $0x78] sm:$0xff] %v2245_v19 }
 0x337 PF: > { %s19_s27 = sadd.s32 1, %s2741_s27  }
 0x338   : > { %p16_p4 = scmp.ge.s32.totalorder %s19_s27, 4  }
 0x33a   :  { %18 = sbr.rel (!%p16_p4) target bundleno = 1 (0x1), region = 93 }

</bundles_post_ra>
